<compile_context>
chip_gen: v5e
topology: v5e:2x2
jax: 0.10.0
libtpu: 0.0.40
codegen_flags: <defaults>
</compile_context>

<pallas_src>
import math
import functools

import jax
import jax.numpy as jnp
import numpy as np
from jax.experimental import pallas as pl
from jax.experimental.pallas import tpu as pltpu


# ----------------------------------------------------------------------------
# Pallas kernel: grid = (batch, layer); residual stream kept in VMEM scratch.
# ----------------------------------------------------------------------------
def encoder_kernel(x_ref, pm_ref,
                   wq_ref, wk_ref, wv_ref, wo_ref,
                   w1_ref, b1_ref, w2_ref, b2_ref,
                   lng_ref, lnb_ref, fg_ref, fb_ref,
                   o_ref,
                   resid_ref, ctx_ref,
                   *, num_heads, eps, masked_self_att):
    l = pl.program_id(1)
    n_layers = pl.num_programs(1)
    _, S, D = x_ref.shape
    dh = D // num_heads
    scale = 1.0 / math.sqrt(dh)

    # Initialize the residual stream at the first layer of each batch element.
    @pl.when(l == 0)
    def _():
        resid_ref[...] = x_ref[0].astype(jnp.float32)

    ret = resid_ref[...]                                   # (S, D) f32

    # Additive attention mask built in-kernel: pad mask (1,S) + causal.
    pad = pm_ref[0].astype(jnp.float32)                    # (1, S)
    mask = jnp.broadcast_to(pad, (S, S))
    if masked_self_att:
        row = jax.lax.broadcasted_iota(jnp.int32, (S, S), 0)
        col = jax.lax.broadcasted_iota(jnp.int32, (S, S), 1)
        mask = mask + jnp.where(row >= col, 0.0, -jnp.inf).astype(jnp.float32)

    def layer_norm(v, g, b):
        # single-pass mean / variance (unbiased=False), rsqrt on EUP
        mu = jnp.mean(v, axis=-1, keepdims=True)
        msq = jnp.mean(v * v, axis=-1, keepdims=True)
        var = jnp.maximum(msq - mu * mu, 0.0)
        return g * (v - mu) * jax.lax.rsqrt(var + eps) + b

    # ---- self-attention sublayer (pre-norm + residual) ----
    y = layer_norm(ret, lng_ref[0, 0:1, :], lnb_ref[0, 0:1, :]).astype(jnp.bfloat16)
    q = jnp.dot(y, wq_ref[0], preferred_element_type=jnp.float32) * scale
    k = jnp.dot(y, wk_ref[0], preferred_element_type=jnp.float32)
    v = jnp.dot(y, wv_ref[0], preferred_element_type=jnp.float32)
    q = q.astype(jnp.bfloat16)
    k = k.astype(jnp.bfloat16)
    v = v.astype(jnp.bfloat16)

    for h in range(num_heads):                             # static head loop
        qh = q[:, h * dh:(h + 1) * dh]
        kh = k[:, h * dh:(h + 1) * dh]
        vh = v[:, h * dh:(h + 1) * dh]
        scores = jax.lax.dot_general(
            qh, kh, (((1,), (1,)), ((), ())),
            preferred_element_type=jnp.float32) + mask
        m = jnp.max(scores, axis=-1, keepdims=True)
        e = jnp.exp(scores - m)
        denom = jnp.sum(e, axis=-1, keepdims=True)
        probs = (e * pl.reciprocal(denom, approx=True)).astype(jnp.bfloat16)
        # write this head's context into its column slab of the ctx buffer
        ctx_ref[:, h * dh:(h + 1) * dh] = jnp.dot(
            probs, vh, preferred_element_type=jnp.float32)

    # single full-D output projection
    att = jnp.dot(ctx_ref[...].astype(jnp.bfloat16), wo_ref[0],
                  preferred_element_type=jnp.float32)
    ret = att + ret                                        # residual

    # ---- feed-forward sublayer (pre-norm + residual) ----
    z = layer_norm(ret, lng_ref[0, 1:2, :], lnb_ref[0, 1:2, :]).astype(jnp.bfloat16)
    h1 = jnp.dot(z, w1_ref[0], preferred_element_type=jnp.float32) + b1_ref[0]
    h1 = jnp.maximum(h1, 0.0).astype(jnp.bfloat16)
    ff = jnp.dot(h1, w2_ref[0], preferred_element_type=jnp.float32) + b2_ref[0]
    ret = ff + ret                                         # residual

    resid_ref[...] = ret

    # final norm (pre_norm=True) + writeback only at the last layer
    @pl.when(l == n_layers - 1)
    def _():
        o_ref[0] = layer_norm(ret, fg_ref[...], fb_ref[...]).astype(o_ref.dtype)


# ----------------------------------------------------------------------------
# Wrapper
# ----------------------------------------------------------------------------
def encoder_or_decoder(x, pad_mask, params, *, num_heads, eps=1e-5,
                       masked_self_att=True):
    B, S, D = x.shape
    L, _, Dff = params["w1"].shape

    kernel = functools.partial(encoder_kernel, num_heads=num_heads, eps=eps,
                               masked_self_att=masked_self_att)

    per_batch = lambda shape: pl.BlockSpec(shape, lambda b, l: (b, 0, 0))
    per_layer = lambda shape: pl.BlockSpec(shape, lambda b, l: (l, 0, 0))

    return pl.pallas_call(
        kernel,
        out_shape=jax.ShapeDtypeStruct((B, S, D), x.dtype),
        grid_spec=pltpu.PrefetchScalarGridSpec(
            num_scalar_prefetch=0,
            grid=(B, L),                              # layers streamed innermost
            in_specs=[
                per_batch((1, S, D)),                 # x
                per_batch((1, 1, S)),                 # pad mask (B,1,S)
                per_layer((1, D, D)),                 # wq  (bf16)
                per_layer((1, D, D)),                 # wk  (bf16)
                per_layer((1, D, D)),                 # wv  (bf16)
                per_layer((1, D, D)),                 # wo  (bf16)
                per_layer((1, D, Dff)),               # w1  (bf16)
                per_layer((1, 1, Dff)),               # b1  (f32)
                per_layer((1, Dff, D)),               # w2  (bf16)
                per_layer((1, 1, D)),                 # b2  (f32)
                per_layer((1, 2, D)),                 # per-layer LN gammas
                per_layer((1, 2, D)),                 # per-layer LN betas
                pl.BlockSpec((1, D), lambda b, l: (0, 0)),   # final LN gamma
                pl.BlockSpec((1, D), lambda b, l: (0, 0)),   # final LN beta
            ],
            out_specs=pl.BlockSpec((1, S, D), lambda b, l: (b, 0, 0)),
            scratch_shapes=[
                pltpu.VMEM((S, D), jnp.float32),      # residual stream
                pltpu.VMEM((S, D), jnp.float32),      # per-layer ctx (all heads)
            ],
        ),
        compiler_params=pltpu.CompilerParams(
            dimension_semantics=("parallel", "arbitrary"),
            vmem_limit_bytes=48 * 1024 * 1024,        # safe on v5e/v6e/v7x
        ),
    )(x, pad_mask,
      params["wq"], params["wk"], params["wv"], params["wo"],
      params["w1"], params["b1"], params["w2"], params["b2"],
      params["ln_g"], params["ln_b"], params["ln_gf"], params["ln_bf"])


# ----------------------------------------------------------------------------
# Pure-JAX f32 reference (mirrors the PyTorch forward, eval mode)
# ----------------------------------------------------------------------------
def reference(x, pad_mask, params, *, num_heads, eps=1e-5, masked_self_att=True):
    B, S, D = x.shape
    L = params["wq"].shape[0]
    dh = D // num_heads
    f32 = lambda a: a.astype(jnp.float32)

    mask = jnp.broadcast_to(pad_mask, (B, S, S)).astype(jnp.float32)
    if masked_self_att:
        causal = jnp.where(jnp.arange(S)[:, None] >= jnp.arange(S)[None, :],
                           0.0, -jnp.inf).astype(jnp.float32)
        mask = mask + causal[None, :, :]

    def ln(v, g, b):
        mu = jnp.mean(v, -1, keepdims=True)
        var = jnp.mean((v - mu) ** 2, -1, keepdims=True)
        return g * (v - mu) / jnp.sqrt(var + eps) + b

    ret = x.astype(jnp.float32)
    for l in range(L):
        y = ln(ret, f32(params["ln_g"][l, 0]), f32(params["ln_b"][l, 0]))
        q = y @ f32(params["wq"][l])
        k = y @ f32(params["wk"][l])
        v = y @ f32(params["wv"][l])
        q = q.reshape(B, S, num_heads, dh).transpose(0, 2, 1, 3)
        k = k.reshape(B, S, num_heads, dh).transpose(0, 2, 3, 1)
        v = v.reshape(B, S, num_heads, dh).transpose(0, 2, 1, 3)
        scores = (q @ k) / math.sqrt(dh) + mask[:, None, :, :]
        probs = jax.nn.softmax(scores, axis=-1)
        ctx = (probs @ v).transpose(0, 2, 1, 3).reshape(B, S, D)
        ret = ctx @ f32(params["wo"][l]) + ret
        z = ln(ret, f32(params["ln_g"][l, 1]), f32(params["ln_b"][l, 1]))
        h1 = jax.nn.relu(z @ f32(params["w1"][l]) + f32(params["b1"][l, 0]))
        ret = h1 @ f32(params["w2"][l]) + f32(params["b2"][l, 0]) + ret
    ret = ln(ret, f32(params["ln_gf"][0]), f32(params["ln_bf"][0]))
    return ret


# ----------------------------------------------------------------------------
# Deterministic parameter init (toan-init std; LN/bias lightly randomized so
# the kernel-vs-reference check is meaningful).
# ----------------------------------------------------------------------------
def init_params(key, num_layers, d_model, d_ff):
    std_att = (2.0 / (5.0 * d_model)) ** 0.5
    std_ff = (2.0 / (d_model + d_ff)) ** 0.5
    ks = jax.random.split(key, 12)
    bf16 = jnp.bfloat16
    p = {
        # MXU weights stored bf16; f32 accumulation happens in the kernel.
        "wq": (jax.random.normal(ks[0], (num_layers, d_model, d_model)) * std_att).astype(bf16),
        "wk": (jax.random.normal(ks[1], (num_layers, d_model, d_model)) * std_att).astype(bf16),
        "wv": (jax.random.normal(ks[2], (num_layers, d_model, d_model)) * std_att).astype(bf16),
        "wo": (jax.random.normal(ks[3], (num_layers, d_model, d_model)) * std_att).astype(bf16),
        "w1": (jax.random.normal(ks[4], (num_layers, d_model, d_ff)) * std_ff).astype(bf16),
        "w2": (jax.random.normal(ks[5], (num_layers, d_ff, d_model)) * std_ff).astype(bf16),
        "b1": 0.02 * jax.random.normal(ks[6], (num_layers, 1, d_ff), jnp.float32),
        "b2": 0.02 * jax.random.normal(ks[7], (num_layers, 1, d_model), jnp.float32),
        # 2 norms per layer + 1 final norm (pre_norm); kept in f32 (VPU math)
        "ln_g": 1.0 + 0.1 * jax.random.normal(ks[8], (num_layers, 2, d_model), jnp.float32),
        "ln_b": 0.1 * jax.random.normal(ks[9], (num_layers, 2, d_model), jnp.float32),
        "ln_gf": 1.0 + 0.1 * jax.random.normal(ks[10], (1, d_model), jnp.float32),
        "ln_bf": 0.1 * jax.random.normal(ks[11], (1, d_model), jnp.float32),
    }
    return p


if __name__ == "__main__":
    B, S, D, H, Dff, L = 2, 8, 32, 4, 64, 2
    key = jax.random.PRNGKey(0)
    k_x, k_p = jax.random.split(key)

    x = jax.random.normal(k_x, (B, S, D), jnp.float32)
    params = init_params(k_p, L, D, Dff)

    # padding mask (B, 1, S): 0 for valid keys, -inf for padded keys
    lengths = jnp.array([S, S - 2])
    pad_mask = jnp.where(jnp.arange(S)[None, None, :] < lengths[:, None, None],
                         0.0, -jnp.inf).astype(jnp.float32)

    out = encoder_or_decoder(x, pad_mask, params, num_heads=H)
    out = jax.block_until_ready(out)

    ref = reference(x, pad_mask, params, num_heads=H)
    # bf16 MXU operands vs f32 reference -> relaxed tolerance (real bugs are O(1))
    np.testing.assert_allclose(np.asarray(out, dtype=np.float32),
                               np.asarray(ref, dtype=np.float32),
                               rtol=3e-2, atol=3e-2)
    print("KERNEL_OK")
</pallas_src>

<mosaic_0001>
module attributes {stable_mosaic.version = 11 : i64} {
  func.func @encoder_kernel(%arg0: i32, %arg1: i32, %arg2: memref<1x8x32xf32, #tpu.memory_space<vmem>>, %arg3: memref<1x1x8xf32, #tpu.memory_space<vmem>>, %arg4: memref<1x32x32xbf16, #tpu.memory_space<vmem>>, %arg5: memref<1x32x32xbf16, #tpu.memory_space<vmem>>, %arg6: memref<1x32x32xbf16, #tpu.memory_space<vmem>>, %arg7: memref<1x32x32xbf16, #tpu.memory_space<vmem>>, %arg8: memref<1x32x64xbf16, #tpu.memory_space<vmem>>, %arg9: memref<1x1x64xf32, #tpu.memory_space<vmem>>, %arg10: memref<1x64x32xbf16, #tpu.memory_space<vmem>>, %arg11: memref<1x1x32xf32, #tpu.memory_space<vmem>>, %arg12: memref<1x2x32xf32, #tpu.memory_space<vmem>>, %arg13: memref<1x2x32xf32, #tpu.memory_space<vmem>>, %arg14: memref<1x32xf32, #tpu.memory_space<vmem>>, %arg15: memref<1x32xf32, #tpu.memory_space<vmem>>, %arg16: memref<1x8x32xf32, #tpu.memory_space<vmem>>, %arg17: memref<8x32xf32, #tpu.memory_space<vmem>>, %arg18: memref<8x32xf32, #tpu.memory_space<vmem>>) attributes {dimension_semantics = [#tpu.dimension_semantics<parallel>, #tpu.dimension_semantics<arbitrary>], iteration_bounds = array<i64: 2, 2>, scalar_prefetch = 0 : i64, scratch_operands = 2 : i64, tpu.core_type = #tpu.core_type<tc>, window_params = [{transform_indices = @transform_0, window_bounds = array<i64: 1, 8, 32>}, {transform_indices = @transform_1, window_bounds = array<i64: 1, 1, 8>}, {transform_indices = @transform_2, window_bounds = array<i64: 1, 32, 32>}, {transform_indices = @transform_3, window_bounds = array<i64: 1, 32, 32>}, {transform_indices = @transform_4, window_bounds = array<i64: 1, 32, 32>}, {transform_indices = @transform_5, window_bounds = array<i64: 1, 32, 32>}, {transform_indices = @transform_6, window_bounds = array<i64: 1, 32, 64>}, {transform_indices = @transform_7, window_bounds = array<i64: 1, 1, 64>}, {transform_indices = @transform_8, window_bounds = array<i64: 1, 64, 32>}, {transform_indices = @transform_9, window_bounds = array<i64: 1, 1, 32>}, {transform_indices = @transform_10, window_bounds = array<i64: 1, 2, 32>}, {transform_indices = @transform_11, window_bounds = array<i64: 1, 2, 32>}, {pipeline_mode = #tpu.pipeline_mode<synchronous>, transform_indices = @transform_12, window_bounds = array<i64: 1, 32>}, {pipeline_mode = #tpu.pipeline_mode<synchronous>, transform_indices = @transform_13, window_bounds = array<i64: 1, 32>}, {transform_indices = @transform_14, window_bounds = array<i64: 1, 8, 32>}]} {
    %c0_i32 = arith.constant 0 : i32
    %0 = arith.cmpi eq, %arg1, %c0_i32 : i32
    %1 = arith.extui %0 : i1 to i32
    %c0_i32_0 = arith.constant 0 : i32
    %2 = arith.cmpi ne, %1, %c0_i32_0 : i32
    scf.if %2 {
      %c0_87 = arith.constant 0 : index
      %c0_88 = arith.constant 0 : index
      %c0_89 = arith.constant 0 : index
      %187 = vector.load %arg2[%c0_87, %c0_88, %c0_89] : memref<1x8x32xf32, #tpu.memory_space<vmem>>, vector<1x8x32xf32>
      %188 = vector.shape_cast %187 : vector<1x8x32xf32> to vector<8x32xf32>
      %c0_90 = arith.constant 0 : index
      %c0_91 = arith.constant 0 : index
      %189 = vector.load %arg17[%c0_90, %c0_91] : memref<8x32xf32, #tpu.memory_space<vmem>>, vector<8x32xf32>
      tpu.vector_store %arg17[%c0_90, %c0_91], %188 {strides = array<i32>} : memref<8x32xf32, #tpu.memory_space<vmem>>, vector<8x32xf32>,
    } else {
    }
    %c0 = arith.constant 0 : index
    %c0_1 = arith.constant 0 : index
    %3 = vector.load %arg17[%c0, %c0_1] : memref<8x32xf32, #tpu.memory_space<vmem>>, vector<8x32xf32>
    %c0_2 = arith.constant 0 : index
    %c0_3 = arith.constant 0 : index
    %c0_4 = arith.constant 0 : index
    %4 = vector.load %arg3[%c0_2, %c0_3, %c0_4] : memref<1x1x8xf32, #tpu.memory_space<vmem>>, vector<1x1x8xf32>
    %5 = vector.shape_cast %4 : vector<1x1x8xf32> to vector<1x8xf32>
    %6 = vector.shape_cast %5 : vector<1x8xf32> to vector<1x8xf32>
    %7 = vector.broadcast %6 : vector<1x8xf32> to vector<8x8xf32>
    %8 = tpu.iota {dimensions = array<i32: 0>} : vector<8x8xi32>
    %9 = tpu.iota {dimensions = array<i32: 1>} : vector<8x8xi32>
    %10 = arith.cmpi sge, %8, %9 : vector<8x8xi32>
    %cst = arith.constant 0.000000e+00 : f32
    %cst_5 = arith.constant 0xFF800000 : f32
    %11 = vector.broadcast %cst : f32 to vector<8x8xf32>
    %12 = vector.broadcast %cst_5 : f32 to vector<8x8xf32>
    %13 = arith.select %10, %11, %12 : vector<8x8xi1>, vector<8x8xf32>
    %14 = arith.addf %7, %13 : vector<8x8xf32>
    %c0_6 = arith.constant 0 : index
    %c0_7 = arith.constant 0 : index
    %c0_8 = arith.constant 0 : index
    %15 = vector.load %arg12[%c0_6, %c0_7, %c0_8] : memref<1x2x32xf32, #tpu.memory_space<vmem>>, vector<1x1x32xf32>
    %16 = vector.shape_cast %15 : vector<1x1x32xf32> to vector<1x32xf32>
    %c0_9 = arith.constant 0 : index
    %c0_10 = arith.constant 0 : index
    %c0_11 = arith.constant 0 : index
    %17 = vector.load %arg13[%c0_9, %c0_10, %c0_11] : memref<1x2x32xf32, #tpu.memory_space<vmem>>, vector<1x1x32xf32>
    %18 = vector.shape_cast %17 : vector<1x1x32xf32> to vector<1x32xf32>
    %cst_12 = arith.constant dense<0.000000e+00> : vector<8xf32>
    %19 = vector.multi_reduction <add>, %3, %cst_12 [1] : vector<8x32xf32> to vector<8xf32>
    %20 = vector.shape_cast %19 : vector<8xf32> to vector<8x1xf32>
    %cst_13 = arith.constant 3.200000e+01 : f32
    %21 = vector.broadcast %cst_13 : f32 to vector<8x1xf32>
    %22 = arith.divf %20, %21 : vector<8x1xf32>
    %23 = arith.mulf %3, %3 : vector<8x32xf32>
    %cst_14 = arith.constant dense<0.000000e+00> : vector<8xf32>
    %24 = vector.multi_reduction <add>, %23, %cst_14 [1] : vector<8x32xf32> to vector<8xf32>
    %25 = vector.shape_cast %24 : vector<8xf32> to vector<8x1xf32>
    %cst_15 = arith.constant 3.200000e+01 : f32
    %26 = vector.broadcast %cst_15 : f32 to vector<8x1xf32>
    %27 = arith.divf %25, %26 : vector<8x1xf32>
    %28 = arith.mulf %22, %22 : vector<8x1xf32>
    %29 = arith.subf %27, %28 : vector<8x1xf32>
    %cst_16 = arith.constant 0.000000e+00 : f32
    %30 = vector.broadcast %cst_16 : f32 to vector<8x1xf32>
    %31 = arith.maximumf %29, %30 : vector<8x1xf32>
    %32 = vector.broadcast %22 : vector<8x1xf32> to vector<8x32xf32>
    %33 = arith.subf %3, %32 : vector<8x32xf32>
    %34 = vector.broadcast %16 : vector<1x32xf32> to vector<8x32xf32>
    %35 = arith.mulf %34, %33 : vector<8x32xf32>
    %cst_17 = arith.constant 9.99999974E-6 : f32
    %36 = vector.broadcast %cst_17 : f32 to vector<8x1xf32>
    %37 = arith.addf %31, %36 : vector<8x1xf32>
    %38 = math.rsqrt %37 : vector<8x1xf32>
    %39 = vector.broadcast %38 : vector<8x1xf32> to vector<8x32xf32>
    %40 = arith.mulf %35, %39 : vector<8x32xf32>
    %41 = vector.broadcast %18 : vector<1x32xf32> to vector<8x32xf32>
    %42 = arith.addf %40, %41 : vector<8x32xf32>
    %43 = arith.truncf %42 : vector<8x32xf32> to vector<8x32xbf16>
    %c0_18 = arith.constant 0 : index
    %c0_19 = arith.constant 0 : index
    %c0_20 = arith.constant 0 : index
    %44 = vector.load %arg4[%c0_18, %c0_19, %c0_20] : memref<1x32x32xbf16, #tpu.memory_space<vmem>>, vector<1x32x32xbf16>
    %45 = vector.shape_cast %44 : vector<1x32x32xbf16> to vector<32x32xbf16>
    %cst_21 = arith.constant dense<0.000000e+00> : vector<8x32xf32>
    %46 = tpu.matmul %43, %45, %cst_21 {dimension_numbers = #tpu.dot_dimension_numbers<[1], [0], [0], [1], [0, 0, 1, 1], [], []>} : vector<8x32xbf16>, vector<32x32xbf16>, vector<8x32xf32> -> vector<8x32xf32>
    %cst_22 = arith.constant 0.353553385 : f32
    %47 = vector.broadcast %cst_22 : f32 to vector<8x32xf32>
    %48 = arith.mulf %46, %47 : vector<8x32xf32>
    %c0_23 = arith.constant 0 : index
    %c0_24 = arith.constant 0 : index
    %c0_25 = arith.constant 0 : index
    %49 = vector.load %arg5[%c0_23, %c0_24, %c0_25] : memref<1x32x32xbf16, #tpu.memory_space<vmem>>, vector<1x32x32xbf16>
    %50 = vector.shape_cast %49 : vector<1x32x32xbf16> to vector<32x32xbf16>
    %cst_26 = arith.constant dense<0.000000e+00> : vector<8x32xf32>
    %51 = tpu.matmul %43, %50, %cst_26 {dimension_numbers = #tpu.dot_dimension_numbers<[1], [0], [0], [1], [0, 0, 1, 1], [], []>} : vector<8x32xbf16>, vector<32x32xbf16>, vector<8x32xf32> -> vector<8x32xf32>
    %c0_27 = arith.constant 0 : index
    %c0_28 = arith.constant 0 : index
    %c0_29 = arith.constant 0 : index
    %52 = vector.load %arg6[%c0_27, %c0_28, %c0_29] : memref<1x32x32xbf16, #tpu.memory_space<vmem>>, vector<1x32x32xbf16>
    %53 = vector.shape_cast %52 : vector<1x32x32xbf16> to vector<32x32xbf16>
    %cst_30 = arith.constant dense<0.000000e+00> : vector<8x32xf32>
    %54 = tpu.matmul %43, %53, %cst_30 {dimension_numbers = #tpu.dot_dimension_numbers<[1], [0], [0], [1], [0, 0, 1, 1], [], []>} : vector<8x32xbf16>, vector<32x32xbf16>, vector<8x32xf32> -> vector<8x32xf32>
    %55 = arith.truncf %48 : vector<8x32xf32> to vector<8x32xbf16>
    %56 = arith.truncf %51 : vector<8x32xf32> to vector<8x32xbf16>
    %57 = arith.truncf %54 : vector<8x32xf32> to vector<8x32xbf16>
    %58 = vector.extract_strided_slice %55 {offsets = [0, 0], sizes = [8, 8], strides = [1, 1]} : vector<8x32xbf16> to vector<8x8xbf16>
    %59 = vector.extract_strided_slice %56 {offsets = [0, 0], sizes = [8, 8], strides = [1, 1]} : vector<8x32xbf16> to vector<8x8xbf16>
    %60 = vector.extract_strided_slice %57 {offsets = [0, 0], sizes = [8, 8], strides = [1, 1]} : vector<8x32xbf16> to vector<8x8xbf16>
    %cst_31 = arith.constant dense<0.000000e+00> : vector<8x8xf32>
    %61 = tpu.matmul %58, %59, %cst_31 {dimension_numbers = #tpu.dot_dimension_numbers<[1], [1], [0], [0], [0, 0, 1, 0], [], []>} : vector<8x8xbf16>, vector<8x8xbf16>, vector<8x8xf32> -> vector<8x8xf32>
    %62 = arith.addf %61, %14 : vector<8x8xf32>
    %cst_32 = arith.constant dense<0xFF800000> : vector<8xf32>
    %63 = vector.multi_reduction <maximumf>, %62, %cst_32 [1] : vector<8x8xf32> to vector<8xf32>
    %64 = vector.shape_cast %63 : vector<8xf32> to vector<8x1xf32>
    %65 = vector.broadcast %64 : vector<8x1xf32> to vector<8x8xf32>
    %66 = arith.subf %62, %65 : vector<8x8xf32>
    %67 = math.exp %66 : vector<8x8xf32>
    %cst_33 = arith.constant dense<0.000000e+00> : vector<8xf32>
    %68 = vector.multi_reduction <add>, %67, %cst_33 [1] : vector<8x8xf32> to vector<8xf32>
    %69 = vector.shape_cast %68 : vector<8xf32> to vector<8x1xf32>
    %70 = tpu.reciprocal %69 {approx = true} : vector<8x1xf32> -> vector<8x1xf32>
    %71 = vector.broadcast %70 : vector<8x1xf32> to vector<8x8xf32>
    %72 = arith.mulf %67, %71 : vector<8x8xf32>
    %73 = arith.truncf %72 : vector<8x8xf32> to vector<8x8xbf16>
    %cst_34 = arith.constant dense<0.000000e+00> : vector<8x8xf32>
    %74 = tpu.matmul %73, %60, %cst_34 {dimension_numbers = #tpu.dot_dimension_numbers<[1], [0], [0], [1], [0, 0, 1, 1], [], []>} : vector<8x8xbf16>, vector<8x8xbf16>, vector<8x8xf32> -> vector<8x8xf32>
    %c0_35 = arith.constant 0 : index
    %c0_36 = arith.constant 0 : index
    %75 = vector.load %arg18[%c0_35, %c0_36] : memref<8x32xf32, #tpu.memory_space<vmem>>, vector<8x8xf32>
    tpu.vector_store %arg18[%c0_35, %c0_36], %74 {strides = array<i32>} : memref<8x32xf32, #tpu.memory_space<vmem>>, vector<8x8xf32>,
    %76 = vector.extract_strided_slice %55 {offsets = [0, 8], sizes = [8, 8], strides = [1, 1]} : vector<8x32xbf16> to vector<8x8xbf16>
    %77 = vector.extract_strided_slice %56 {offsets = [0, 8], sizes = [8, 8], strides = [1, 1]} : vector<8x32xbf16> to vector<8x8xbf16>
    %78 = vector.extract_strided_slice %57 {offsets = [0, 8], sizes = [8, 8], strides = [1, 1]} : vector<8x32xbf16> to vector<8x8xbf16>
    %cst_37 = arith.constant dense<0.000000e+00> : vector<8x8xf32>
    %79 = tpu.matmul %76, %77, %cst_37 {dimension_numbers = #tpu.dot_dimension_numbers<[1], [1], [0], [0], [0, 0, 1, 0], [], []>} : vector<8x8xbf16>, vector<8x8xbf16>, vector<8x8xf32> -> vector<8x8xf32>
    %80 = arith.addf %79, %14 : vector<8x8xf32>
    %cst_38 = arith.constant dense<0xFF800000> : vector<8xf32>
    %81 = vector.multi_reduction <maximumf>, %80, %cst_38 [1] : vector<8x8xf32> to vector<8xf32>
    %82 = vector.shape_cast %81 : vector<8xf32> to vector<8x1xf32>
    %83 = vector.broadcast %82 : vector<8x1xf32> to vector<8x8xf32>
    %84 = arith.subf %80, %83 : vector<8x8xf32>
    %85 = math.exp %84 : vector<8x8xf32>
    %cst_39 = arith.constant dense<0.000000e+00> : vector<8xf32>
    %86 = vector.multi_reduction <add>, %85, %cst_39 [1] : vector<8x8xf32> to vector<8xf32>
    %87 = vector.shape_cast %86 : vector<8xf32> to vector<8x1xf32>
    %88 = tpu.reciprocal %87 {approx = true} : vector<8x1xf32> -> vector<8x1xf32>
    %89 = vector.broadcast %88 : vector<8x1xf32> to vector<8x8xf32>
    %90 = arith.mulf %85, %89 : vector<8x8xf32>
    %91 = arith.truncf %90 : vector<8x8xf32> to vector<8x8xbf16>
    %cst_40 = arith.constant dense<0.000000e+00> : vector<8x8xf32>
    %92 = tpu.matmul %91, %78, %cst_40 {dimension_numbers = #tpu.dot_dimension_numbers<[1], [0], [0], [1], [0, 0, 1, 1], [], []>} : vector<8x8xbf16>, vector<8x8xbf16>, vector<8x8xf32> -> vector<8x8xf32>
    %c0_41 = arith.constant 0 : index
    %c8 = arith.constant 8 : index
    %93 = vector.load %arg18[%c0_41, %c8] : memref<8x32xf32, #tpu.memory_space<vmem>>, vector<8x8xf32>
    tpu.vector_store %arg18[%c0_41, %c8], %92 {strides = array<i32>} : memref<8x32xf32, #tpu.memory_space<vmem>>, vector<8x8xf32>,
    %94 = vector.extract_strided_slice %55 {offsets = [0, 16], sizes = [8, 8], strides = [1, 1]} : vector<8x32xbf16> to vector<8x8xbf16>
    %95 = vector.extract_strided_slice %56 {offsets = [0, 16], sizes = [8, 8], strides = [1, 1]} : vector<8x32xbf16> to vector<8x8xbf16>
    %96 = vector.extract_strided_slice %57 {offsets = [0, 16], sizes = [8, 8], strides = [1, 1]} : vector<8x32xbf16> to vector<8x8xbf16>
    %cst_42 = arith.constant dense<0.000000e+00> : vector<8x8xf32>
    %97 = tpu.matmul %94, %95, %cst_42 {dimension_numbers = #tpu.dot_dimension_numbers<[1], [1], [0], [0], [0, 0, 1, 0], [], []>} : vector<8x8xbf16>, vector<8x8xbf16>, vector<8x8xf32> -> vector<8x8xf32>
    %98 = arith.addf %97, %14 : vector<8x8xf32>
    %cst_43 = arith.constant dense<0xFF800000> : vector<8xf32>
    %99 = vector.multi_reduction <maximumf>, %98, %cst_43 [1] : vector<8x8xf32> to vector<8xf32>
    %100 = vector.shape_cast %99 : vector<8xf32> to vector<8x1xf32>
    %101 = vector.broadcast %100 : vector<8x1xf32> to vector<8x8xf32>
    %102 = arith.subf %98, %101 : vector<8x8xf32>
    %103 = math.exp %102 : vector<8x8xf32>
    %cst_44 = arith.constant dense<0.000000e+00> : vector<8xf32>
    %104 = vector.multi_reduction <add>, %103, %cst_44 [1] : vector<8x8xf32> to vector<8xf32>
    %105 = vector.shape_cast %104 : vector<8xf32> to vector<8x1xf32>
    %106 = tpu.reciprocal %105 {approx = true} : vector<8x1xf32> -> vector<8x1xf32>
    %107 = vector.broadcast %106 : vector<8x1xf32> to vector<8x8xf32>
    %108 = arith.mulf %103, %107 : vector<8x8xf32>
    %109 = arith.truncf %108 : vector<8x8xf32> to vector<8x8xbf16>
    %cst_45 = arith.constant dense<0.000000e+00> : vector<8x8xf32>
    %110 = tpu.matmul %109, %96, %cst_45 {dimension_numbers = #tpu.dot_dimension_numbers<[1], [0], [0], [1], [0, 0, 1, 1], [], []>} : vector<8x8xbf16>, vector<8x8xbf16>, vector<8x8xf32> -> vector<8x8xf32>
    %c0_46 = arith.constant 0 : index
    %c16 = arith.constant 16 : index
    %111 = vector.load %arg18[%c0_46, %c16] : memref<8x32xf32, #tpu.memory_space<vmem>>, vector<8x8xf32>
    tpu.vector_store %arg18[%c0_46, %c16], %110 {strides = array<i32>} : memref<8x32xf32, #tpu.memory_space<vmem>>, vector<8x8xf32>,
    %112 = vector.extract_strided_slice %55 {offsets = [0, 24], sizes = [8, 8], strides = [1, 1]} : vector<8x32xbf16> to vector<8x8xbf16>
    %113 = vector.extract_strided_slice %56 {offsets = [0, 24], sizes = [8, 8], strides = [1, 1]} : vector<8x32xbf16> to vector<8x8xbf16>
    %114 = vector.extract_strided_slice %57 {offsets = [0, 24], sizes = [8, 8], strides = [1, 1]} : vector<8x32xbf16> to vector<8x8xbf16>
    %cst_47 = arith.constant dense<0.000000e+00> : vector<8x8xf32>
    %115 = tpu.matmul %112, %113, %cst_47 {dimension_numbers = #tpu.dot_dimension_numbers<[1], [1], [0], [0], [0, 0, 1, 0], [], []>} : vector<8x8xbf16>, vector<8x8xbf16>, vector<8x8xf32> -> vector<8x8xf32>
    %116 = arith.addf %115, %14 : vector<8x8xf32>
    %cst_48 = arith.constant dense<0xFF800000> : vector<8xf32>
    %117 = vector.multi_reduction <maximumf>, %116, %cst_48 [1] : vector<8x8xf32> to vector<8xf32>
    %118 = vector.shape_cast %117 : vector<8xf32> to vector<8x1xf32>
    %119 = vector.broadcast %118 : vector<8x1xf32> to vector<8x8xf32>
    %120 = arith.subf %116, %119 : vector<8x8xf32>
    %121 = math.exp %120 : vector<8x8xf32>
    %cst_49 = arith.constant dense<0.000000e+00> : vector<8xf32>
    %122 = vector.multi_reduction <add>, %121, %cst_49 [1] : vector<8x8xf32> to vector<8xf32>
    %123 = vector.shape_cast %122 : vector<8xf32> to vector<8x1xf32>
    %124 = tpu.reciprocal %123 {approx = true} : vector<8x1xf32> -> vector<8x1xf32>
    %125 = vector.broadcast %124 : vector<8x1xf32> to vector<8x8xf32>
    %126 = arith.mulf %121, %125 : vector<8x8xf32>
    %127 = arith.truncf %126 : vector<8x8xf32> to vector<8x8xbf16>
    %cst_50 = arith.constant dense<0.000000e+00> : vector<8x8xf32>
    %128 = tpu.matmul %127, %114, %cst_50 {dimension_numbers = #tpu.dot_dimension_numbers<[1], [0], [0], [1], [0, 0, 1, 1], [], []>} : vector<8x8xbf16>, vector<8x8xbf16>, vector<8x8xf32> -> vector<8x8xf32>
    %c0_51 = arith.constant 0 : index
    %c24 = arith.constant 24 : index
    %129 = vector.load %arg18[%c0_51, %c24] : memref<8x32xf32, #tpu.memory_space<vmem>>, vector<8x8xf32>
    tpu.vector_store %arg18[%c0_51, %c24], %128 {strides = array<i32>} : memref<8x32xf32, #tpu.memory_space<vmem>>, vector<8x8xf32>,
    %c0_52 = arith.constant 0 : index
    %c0_53 = arith.constant 0 : index
    %130 = vector.load %arg18[%c0_52, %c0_53] : memref<8x32xf32, #tpu.memory_space<vmem>>, vector<8x32xf32>
    %131 = arith.truncf %130 : vector<8x32xf32> to vector<8x32xbf16>
    %c0_54 = arith.constant 0 : index
    %c0_55 = arith.constant 0 : index
    %c0_56 = arith.constant 0 : index
    %132 = vector.load %arg7[%c0_54, %c0_55, %c0_56] : memref<1x32x32xbf16, #tpu.memory_space<vmem>>, vector<1x32x32xbf16>
    %133 = vector.shape_cast %132 : vector<1x32x32xbf16> to vector<32x32xbf16>
    %cst_57 = arith.constant dense<0.000000e+00> : vector<8x32xf32>
    %134 = tpu.matmul %131, %133, %cst_57 {dimension_numbers = #tpu.dot_dimension_numbers<[1], [0], [0], [1], [0, 0, 1, 1], [], []>} : vector<8x32xbf16>, vector<32x32xbf16>, vector<8x32xf32> -> vector<8x32xf32>
    %135 = arith.addf %134, %3 : vector<8x32xf32>
    %c0_58 = arith.constant 0 : index
    %c1 = arith.constant 1 : index
    %c0_59 = arith.constant 0 : index
    %136 = vector.load %arg12[%c0_58, %c1, %c0_59] : memref<1x2x32xf32, #tpu.memory_space<vmem>>, vector<1x1x32xf32>
    %137 = vector.shape_cast %136 : vector<1x1x32xf32> to vector<1x32xf32>
    %c0_60 = arith.constant 0 : index
    %c1_61 = arith.constant 1 : index
    %c0_62 = arith.constant 0 : index
    %138 = vector.load %arg13[%c0_60, %c1_61, %c0_62] : memref<1x2x32xf32, #tpu.memory_space<vmem>>, vector<1x1x32xf32>
    %139 = vector.shape_cast %138 : vector<1x1x32xf32> to vector<1x32xf32>
    %cst_63 = arith.constant dense<0.000000e+00> : vector<8xf32>
    %140 = vector.multi_reduction <add>, %135, %cst_63 [1] : vector<8x32xf32> to vector<8xf32>
    %141 = vector.shape_cast %140 : vector<8xf32> to vector<8x1xf32>
    %cst_64 = arith.constant 3.200000e+01 : f32
    %142 = vector.broadcast %cst_64 : f32 to vector<8x1xf32>
    %143 = arith.divf %141, %142 : vector<8x1xf32>
    %144 = arith.mulf %135, %135 : vector<8x32xf32>
    %cst_65 = arith.constant dense<0.000000e+00> : vector<8xf32>
    %145 = vector.multi_reduction <add>, %144, %cst_65 [1] : vector<8x32xf32> to vector<8xf32>
    %146 = vector.shape_cast %145 : vector<8xf32> to vector<8x1xf32>
    %cst_66 = arith.constant 3.200000e+01 : f32
    %147 = vector.broadcast %cst_66 : f32 to vector<8x1xf32>
    %148 = arith.divf %146, %147 : vector<8x1xf32>
    %149 = arith.mulf %143, %143 : vector<8x1xf32>
    %150 = arith.subf %148, %149 : vector<8x1xf32>
    %cst_67 = arith.constant 0.000000e+00 : f32
    %151 = vector.broadcast %cst_67 : f32 to vector<8x1xf32>
    %152 = arith.maximumf %150, %151 : vector<8x1xf32>
    %153 = vector.broadcast %143 : vector<8x1xf32> to vector<8x32xf32>
    %154 = arith.subf %135, %153 : vector<8x32xf32>
    %155 = vector.broadcast %137 : vector<1x32xf32> to vector<8x32xf32>
    %156 = arith.mulf %155, %154 : vector<8x32xf32>
    %cst_68 = arith.constant 9.99999974E-6 : f32
    %157 = vector.broadcast %cst_68 : f32 to vector<8x1xf32>
    %158 = arith.addf %152, %157 : vector<8x1xf32>
    %159 = math.rsqrt %158 : vector<8x1xf32>
    %160 = vector.broadcast %159 : vector<8x1xf32> to vector<8x32xf32>
    %161 = arith.mulf %156, %160 : vector<8x32xf32>
    %162 = vector.broadcast %139 : vector<1x32xf32> to vector<8x32xf32>
    %163 = arith.addf %161, %162 : vector<8x32xf32>
    %164 = arith.truncf %163 : vector<8x32xf32> to vector<8x32xbf16>
    %c0_69 = arith.constant 0 : index
    %c0_70 = arith.constant 0 : index
    %c0_71 = arith.constant 0 : index
    %165 = vector.load %arg8[%c0_69, %c0_70, %c0_71] : memref<1x32x64xbf16, #tpu.memory_space<vmem>>, vector<1x32x64xbf16>
    %166 = vector.shape_cast %165 : vector<1x32x64xbf16> to vector<32x64xbf16>
    %cst_72 = arith.constant dense<0.000000e+00> : vector<8x64xf32>
    %167 = tpu.matmul %164, %166, %cst_72 {dimension_numbers = #tpu.dot_dimension_numbers<[1], [0], [0], [1], [0, 0, 1, 1], [], []>} : vector<8x32xbf16>, vector<32x64xbf16>, vector<8x64xf32> -> vector<8x64xf32>
    %c0_73 = arith.constant 0 : index
    %c0_74 = arith.constant 0 : index
    %c0_75 = arith.constant 0 : index
    %168 = vector.load %arg9[%c0_73, %c0_74, %c0_75] : memref<1x1x64xf32, #tpu.memory_space<vmem>>, vector<1x1x64xf32>
    %169 = vector.shape_cast %168 : vector<1x1x64xf32> to vector<1x64xf32>
    %170 = vector.broadcast %169 : vector<1x64xf32> to vector<8x64xf32>
    %171 = arith.addf %167, %170 : vector<8x64xf32>
    %cst_76 = arith.constant 0.000000e+00 : f32
    %172 = vector.broadcast %cst_76 : f32 to vector<8x64xf32>
    %173 = arith.maximumf %171, %172 : vector<8x64xf32>
    %174 = arith.truncf %173 : vector<8x64xf32> to vector<8x64xbf16>
    %c0_77 = arith.constant 0 : index
    %c0_78 = arith.constant 0 : index
    %c0_79 = arith.constant 0 : index
    %175 = vector.load %arg10[%c0_77, %c0_78, %c0_79] : memref<1x64x32xbf16, #tpu.memory_space<vmem>>, vector<1x64x32xbf16>
    %176 = vector.shape_cast %175 : vector<1x64x32xbf16> to vector<64x32xbf16>
    %cst_80 = arith.constant dense<0.000000e+00> : vector<8x32xf32>
    %177 = tpu.matmul %174, %176, %cst_80 {dimension_numbers = #tpu.dot_dimension_numbers<[1], [0], [0], [1], [0, 0, 1, 1], [], []>} : vector<8x64xbf16>, vector<64x32xbf16>, vector<8x32xf32> -> vector<8x32xf32>
    %c0_81 = arith.constant 0 : index
    %c0_82 = arith.constant 0 : index
    %c0_83 = arith.constant 0 : index
    %178 = vector.load %arg11[%c0_81, %c0_82, %c0_83] : memref<1x1x32xf32, #tpu.memory_space<vmem>>, vector<1x1x32xf32>
    %179 = vector.shape_cast %178 : vector<1x1x32xf32> to vector<1x32xf32>
    %180 = vector.broadcast %179 : vector<1x32xf32> to vector<8x32xf32>
    %181 = arith.addf %177, %180 : vector<8x32xf32>
    %182 = arith.addf %181, %135 : vector<8x32xf32>
    %c0_84 = arith.constant 0 : index
    %c0_85 = arith.constant 0 : index
    %183 = vector.load %arg17[%c0_84, %c0_85] : memref<8x32xf32, #tpu.memory_space<vmem>>, vector<8x32xf32>
    tpu.vector_store %arg17[%c0_84, %c0_85], %182 {strides = array<i32>} : memref<8x32xf32, #tpu.memory_space<vmem>>, vector<8x32xf32>,
    %c1_i32 = arith.constant 1 : i32
    %184 = arith.cmpi eq, %arg1, %c1_i32 : i32
    %185 = arith.extui %184 : i1 to i32
    %c0_i32_86 = arith.constant 0 : i32
    %186 = arith.cmpi ne, %185, %c0_i32_86 : i32
    scf.if %186 {
      %c0_87 = arith.constant 0 : index
      %c0_88 = arith.constant 0 : index
      %187 = vector.load %arg14[%c0_87, %c0_88] : memref<1x32xf32, #tpu.memory_space<vmem>>, vector<1x32xf32>
      %c0_89 = arith.constant 0 : index
      %c0_90 = arith.constant 0 : index
      %188 = vector.load %arg15[%c0_89, %c0_90] : memref<1x32xf32, #tpu.memory_space<vmem>>, vector<1x32xf32>
      %cst_91 = arith.constant dense<0.000000e+00> : vector<8xf32>
      %189 = vector.multi_reduction <add>, %182, %cst_91 [1] : vector<8x32xf32> to vector<8xf32>
      %190 = vector.shape_cast %189 : vector<8xf32> to vector<8x1xf32>
      %cst_92 = arith.constant 3.200000e+01 : f32
      %191 = vector.broadcast %cst_92 : f32 to vector<8x1xf32>
      %192 = arith.divf %190, %191 : vector<8x1xf32>
      %193 = arith.mulf %182, %182 : vector<8x32xf32>
      %cst_93 = arith.constant dense<0.000000e+00> : vector<8xf32>
      %194 = vector.multi_reduction <add>, %193, %cst_93 [1] : vector<8x32xf32> to vector<8xf32>
      %195 = vector.shape_cast %194 : vector<8xf32> to vector<8x1xf32>
      %cst_94 = arith.constant 3.200000e+01 : f32
      %196 = vector.broadcast %cst_94 : f32 to vector<8x1xf32>
      %197 = arith.divf %195, %196 : vector<8x1xf32>
      %198 = arith.mulf %192, %192 : vector<8x1xf32>
      %199 = arith.subf %197, %198 : vector<8x1xf32>
      %cst_95 = arith.constant 0.000000e+00 : f32
      %200 = vector.broadcast %cst_95 : f32 to vector<8x1xf32>
      %201 = arith.maximumf %199, %200 : vector<8x1xf32>
      %202 = vector.broadcast %192 : vector<8x1xf32> to vector<8x32xf32>
      %203 = arith.subf %182, %202 : vector<8x32xf32>
      %204 = vector.broadcast %187 : vector<1x32xf32> to vector<8x32xf32>
      %205 = arith.mulf %204, %203 : vector<8x32xf32>
      %cst_96 = arith.constant 9.99999974E-6 : f32
      %206 = vector.broadcast %cst_96 : f32 to vector<8x1xf32>
      %207 = arith.addf %201, %206 : vector<8x1xf32>
      %208 = math.rsqrt %207 : vector<8x1xf32>
      %209 = vector.broadcast %208 : vector<8x1xf32> to vector<8x32xf32>
      %210 = arith.mulf %205, %209 : vector<8x32xf32>
      %211 = vector.broadcast %188 : vector<1x32xf32> to vector<8x32xf32>
      %212 = arith.addf %210, %211 : vector<8x32xf32>
      %c0_97 = arith.constant 0 : index
      %c0_98 = arith.constant 0 : index
      %c0_99 = arith.constant 0 : index
      %213 = vector.load %arg16[%c0_97, %c0_98, %c0_99] : memref<1x8x32xf32, #tpu.memory_space<vmem>>, vector<1x8x32xf32>
      %214 = vector.shape_cast %213 : vector<1x8x32xf32> to vector<8x32xf32>
      %215 = vector.shape_cast %212 : vector<8x32xf32> to vector<1x8x32xf32>
      tpu.vector_store %arg16[%c0_97, %c0_98, %c0_99], %215 {strides = array<i32>} : memref<1x8x32xf32, #tpu.memory_space<vmem>>, vector<1x8x32xf32>,
    } else {
    }
    return
  }
  func.func @transform_0(%arg0: i32, %arg1: i32) -> (i32, i32, i32) {
    %c0_i32 = arith.constant 0 : i32
    %c0_i32_0 = arith.constant 0 : i32
    %c0_i32_1 = arith.constant 0 : i32
    return %arg0, %c0_i32, %c0_i32_0 : i32, i32, i32
  }
  func.func @transform_1(%arg0: i32, %arg1: i32) -> (i32, i32, i32) {
    %c0_i32 = arith.constant 0 : i32
    %c0_i32_0 = arith.constant 0 : i32
    %c0_i32_1 = arith.constant 0 : i32
    return %arg0, %c0_i32, %c0_i32_0 : i32, i32, i32
  }
  func.func @transform_2(%arg0: i32, %arg1: i32) -> (i32, i32, i32) {
    %c0_i32 = arith.constant 0 : i32
    %c0_i32_0 = arith.constant 0 : i32
    %c0_i32_1 = arith.constant 0 : i32
    return %arg1, %c0_i32, %c0_i32_0 : i32, i32, i32
  }
  func.func @transform_3(%arg0: i32, %arg1: i32) -> (i32, i32, i32) {
    %c0_i32 = arith.constant 0 : i32
    %c0_i32_0 = arith.constant 0 : i32
    %c0_i32_1 = arith.constant 0 : i32
    return %arg1, %c0_i32, %c0_i32_0 : i32, i32, i32
  }
  func.func @transform_4(%arg0: i32, %arg1: i32) -> (i32, i32, i32) {
    %c0_i32 = arith.constant 0 : i32
    %c0_i32_0 = arith.constant 0 : i32
    %c0_i32_1 = arith.constant 0 : i32
    return %arg1, %c0_i32, %c0_i32_0 : i32, i32, i32
  }
  func.func @transform_5(%arg0: i32, %arg1: i32) -> (i32, i32, i32) {
    %c0_i32 = arith.constant 0 : i32
    %c0_i32_0 = arith.constant 0 : i32
    %c0_i32_1 = arith.constant 0 : i32
    return %arg1, %c0_i32, %c0_i32_0 : i32, i32, i32
  }
  func.func @transform_6(%arg0: i32, %arg1: i32) -> (i32, i32, i32) {
    %c0_i32 = arith.constant 0 : i32
    %c0_i32_0 = arith.constant 0 : i32
    %c0_i32_1 = arith.constant 0 : i32
    return %arg1, %c0_i32, %c0_i32_0 : i32, i32, i32
  }
  func.func @transform_7(%arg0: i32, %arg1: i32) -> (i32, i32, i32) {
    %c0_i32 = arith.constant 0 : i32
    %c0_i32_0 = arith.constant 0 : i32
    %c0_i32_1 = arith.constant 0 : i32
    return %arg1, %c0_i32, %c0_i32_0 : i32, i32, i32
  }
  func.func @transform_8(%arg0: i32, %arg1: i32) -> (i32, i32, i32) {
    %c0_i32 = arith.constant 0 : i32
    %c0_i32_0 = arith.constant 0 : i32
    %c0_i32_1 = arith.constant 0 : i32
    return %arg1, %c0_i32, %c0_i32_0 : i32, i32, i32
  }
  func.func @transform_9(%arg0: i32, %arg1: i32) -> (i32, i32, i32) {
    %c0_i32 = arith.constant 0 : i32
    %c0_i32_0 = arith.constant 0 : i32
    %c0_i32_1 = arith.constant 0 : i32
    return %arg1, %c0_i32, %c0_i32_0 : i32, i32, i32
  }
  func.func @transform_10(%arg0: i32, %arg1: i32) -> (i32, i32, i32) {
    %c0_i32 = arith.constant 0 : i32
    %c0_i32_0 = arith.constant 0 : i32
    %c0_i32_1 = arith.constant 0 : i32
    return %arg1, %c0_i32, %c0_i32_0 : i32, i32, i32
  }
  func.func @transform_11(%arg0: i32, %arg1: i32) -> (i32, i32, i32) {
    %c0_i32 = arith.constant 0 : i32
    %c0_i32_0 = arith.constant 0 : i32
    %c0_i32_1 = arith.constant 0 : i32
    return %arg1, %c0_i32, %c0_i32_0 : i32, i32, i32
  }
  func.func @transform_12(%arg0: i32, %arg1: i32) -> (i32, i32) {
    %c0_i32 = arith.constant 0 : i32
    %c0_i32_0 = arith.constant 0 : i32
    %c0_i32_1 = arith.constant 0 : i32
    return %c0_i32, %c0_i32_0 : i32, i32
  }
  func.func @transform_13(%arg0: i32, %arg1: i32) -> (i32, i32) {
    %c0_i32 = arith.constant 0 : i32
    %c0_i32_0 = arith.constant 0 : i32
    %c0_i32_1 = arith.constant 0 : i32
    return %c0_i32, %c0_i32_0 : i32, i32
  }
  func.func @transform_14(%arg0: i32, %arg1: i32) -> (i32, i32, i32) {
    %c0_i32 = arith.constant 0 : i32
    %c0_i32_0 = arith.constant 0 : i32
    %c0_i32_1 = arith.constant 0 : i32
    return %arg0, %c0_i32, %c0_i32_0 : i32, i32, i32
  }
}

</mosaic_0001>

<bundles_post_ra>
// kernel: tpu_custom_call.1
= control target key start
LH: loop header
LB: loop body
LE: loop exit
PB: predicated region body
PF: predicated region fallthrough
CT: control target
= control target key end

     0   :  { %s2797_s0 = inlined_call_operand.hbm [shape: f32[2,8,32], index: 0, kind: input, shape index: {}]   ;;  %s2798_s1 = inlined_call_operand.hbm [shape: f32[2,1,8], index: 1, kind: input, shape index: {}]   ;;  %s2799_s2 = inlined_call_operand.vmem [shape: bf16[2,32,32], index: 2, kind: input, shape index: {}]   ;;  %s2800_s3 = inlined_call_operand.vmem [shape: bf16[2,32,32], index: 3, kind: input, shape index: {}]   ;;  %s2801_s4 = inlined_call_operand.vmem [shape: bf16[2,32,32], index: 4, kind: input, shape index: {}]   ;;  %s2802_s5 = inlined_call_operand.hbm [shape: bf16[2,32,32], index: 5, kind: input, shape index: {}]   ;;  %s2803_s6 = inlined_call_operand.hbm [shape: bf16[2,32,64], index: 6, kind: input, shape index: {}]   ;;  %s2804_s7 = inlined_call_operand.hbm [shape: f32[2,1,64], index: 7, kind: input, shape index: {}]   ;;  %s2805_s8 = inlined_call_operand.vmem [shape: bf16[2,64,32], index: 8, kind: input, shape index: {}]   ;;  %s2806_s9 = inlined_call_operand.hbm [shape: f32[2,1,32], index: 9, kind: input, shape index: {}]   ;;  %s2807_s10 = inlined_call_operand.vmem [shape: f32[2,2,32], index: 10, kind: input, shape index: {}]   ;;  %s2808_s11 = inlined_call_operand.vmem [shape: f32[2,2,32], index: 11, kind: input, shape index: {}]   ;;  %s2809_s12 = inlined_call_operand.vmem [shape: f32[1,32], index: 12, kind: input, shape index: {}]   ;;  %s2810_s13 = inlined_call_operand.vmem [shape: f32[1,32], index: 13, kind: input, shape index: {}]   ;;  %s2811_s14 = inlined_call_operand.hbm [shape: f32[2,8,32], index: 14, kind: output, shape index: {}]  }
   0x1   :  { %2830 = sst [smem:[#allocation37_spill]] %s2797_s0 }
   0x2   :  { %2831 = sst [smem:[#allocation38_spill]] %s2798_s1 }
   0x3   :  { %2832 = sst [smem:[#allocation39_spill]] %s2799_s2 }
   0x4   :  { %2833 = sst [smem:[#allocation40_spill]] %s2800_s3 }
   0x5   :  { %2834 = sst [smem:[#allocation41_spill]] %s2801_s4 }
   0x6   :  { %2835 = sst [smem:[#allocation42_spill]] %s2802_s5 }
   0x7   :  { %2836 = sst [smem:[#allocation43_spill]] %s2803_s6 }
   0x8   :  { %2837 = sst [smem:[#allocation44_spill]] %s2804_s7 }
   0x9   :  { %2838 = sst [smem:[#allocation45_spill]] %s2805_s8 }
   0xa   :  { %2839 = sst [smem:[#allocation46_spill]] %s2806_s9 }
   0xb   :  { %2840 = sst [smem:[#allocation47_spill]] %s2807_s10 }
   0xc   :  { %2841 = sst [smem:[#allocation48_spill]] %s2808_s11 }
   0xd   :  { %2842 = sst [smem:[#allocation49_spill]] %s2809_s12 }
   0xe   :  { %2843 = sst [smem:[#allocation50_spill]] %s2810_s13 }
   0xf   :  { %2844 = sst [smem:[#allocation51_spill]] %s2811_s14 }
  0x10   :  { %19 = vsyncpa [#allocation5], 0 }
  0x11   :  { %21 = vsyncpa [#allocation5 + $0x1], 0 }
  0x12   :  { %22 = vsyncpa [#allocation8], 0 }
  0x13   :  { %24 = vsyncpa [#allocation8 + $0x1], 0 }
  0x14   :  { %25 = vsyncpa [#allocation11], 0 }
  0x15   :  { %27 = vsyncpa [#allocation11 + $0x1], 0 }
  0x16   :  { %28 = vsyncpa [#allocation14], 0 }
  0x17   :  { %30 = vsyncpa [#allocation14 + $0x1], 0 }
  0x18   :  { %31 = vsyncpa [#allocation6], 0 }
  0x19   :  { %33 = vsyncpa [#allocation6 + $0x1], 0  ;;  %s2359_s29 = smov 0   ;;  %s2361_s30 = smov 0  }
  0x1a   :  { %s2363_s15 = smov 0   ;;  %s2365_s16 = smov 0  }
  0x1b   :  { %s2367_s17 = smov 0   ;;  %s2369_s18 = smov 0  }
  0x1c   :  { %s2371_s19 = smov 0   ;;  %s2373_s20 = smov 0  }
  0x1d   :  { %s2375_s21 = smov 0   ;;  %s2377_s22 = smov 0  }
  0x1e   :  { %s2379_s23 = smov 0  }
  0x1f LB: > { %2845 = sst [smem:[#allocation22_spill]] %s2236_s30  ;;  %s2415_s24 = sadd.s32 4294967295, %s2272_s23   ;;  %s2272_s23 = sphi %s2379_s23, %s39_s23   ;;  %s2268_s22 = sphi %s2377_s22, %s2906_s22   ;;  %s2264_s21 = sphi %s2375_s21, %s2910_s21   ;;  %s2260_s20 = sphi %s2373_s20, %s2904_s20   ;;  %s2256_s19 = sphi %s2371_s19, %s2909_s19   ;;  %s2252_s18 = sphi %s2369_s18, %s2903_s18   ;;  %s2248_s17 = sphi %s2367_s17, %s2908_s17   ;;  %s2244_s16 = sphi %s2365_s16, %s2907_s16   ;;  %s2240_s15 = sphi %s2363_s15, %s2901_s15   ;;  %s2236_s30 = sphi %s2361_s30, %s2900_s30   ;;  %s2232_s29 = sphi %s2359_s29, %s2899_s29  }
  0x20   : > { %2846 = sst [smem:[#allocation23_spill]] %s2240_s15  ;;  %s1662_s25 = sadd.s32 4294967294, %s2272_s23  }
  0x21   : > { %2847 = sst [smem:[#allocation24_spill]] %s2244_s16  ;;  %s48_s26 = sadd.s32 1, %s2264_s21 }
  0x22   : > { %2848 = sst [smem:[#allocation25_spill]] %s2252_s18  ;;  %s51_s27 = sadd.s32 1, %s2268_s22 }
  0x23   : > { %2849 = sst [smem:[#allocation26_spill]] %s2256_s19  ;;  %p49_p0 = scmp.ge.s32.totalorder %s48_s26, 2 }
  0x24   : > { %2850 = sst [smem:[#allocation27_spill]] %s2260_s20  ;;  %s58_s28 = sadd.s32 1, %s2252_s18 }
  0x25   : > { %2851 = sst [smem:[#allocation28_spill]] %s2268_s22  ;;  %p65_p1 = scmp.ne.s32.totalorder %s2252_s18, %s2248_s17 }
  0x26   : > { %2852 = sst [smem:[#allocation29_spill]] %s2272_s23  ;;  %p66_p2 = scmp.eq.s32.totalorder %s2272_s23, 0 }
  0x27   : > { %s2912_s26 = smov (%p49_p0, %s48_s26), 0  ;;  %s2914_s27 = smov (!%p49_p0, %s51_s27), %s2268_s22 }
  0x28   : > { %2853 = sst [smem:[#allocation30_spill]] %s2912_s26  ;;  %p2432_p3 = por %p66_p2, %p65_p1 }
  0x29   : > { %p2814_p4 = scmp.ne.s32.totalorder %s2248_s17, %s2244_s16  ;;  %p53_p5 = scmp.ge.s32.totalorder %s2914_s27, 2 }
  0x2a   : > { %p72_p6 = scmp.eq.s32.totalorder %s2415_s24, 0  ;;  %s185_s20 = ssub.s32 %s2264_s21, %s2912_s26 }
  0x2b   : > { %s188_s13 = sadd.s32 1, %s2240_s15  ;;  %s2916_s27 = smov (%p53_p5, %s2914_s27), 0 }
  0x2c   : > { %2855 = sst [smem:[#allocation31_spill]] %s2916_s27  ;;  %p2449_p7 = por %p72_p6, %p2814_p4 }
  0x2d   : > { %p186_p8 = scmp.eq.s32.totalorder %s185_s20, 0  ;;  %s55_s11 = ssub.s32 %s2268_s22, %s2916_s27 }
  0x2e   : > { %p195_p9 = scmp.ne.s32.totalorder %s2240_s15, %s2236_s30  ;;  %p56_p10 = scmp.eq.s32.totalorder %s55_s11, 0 }
  0x2f   : > { %p201_p11 = scmp.ne.s32.totalorder %s2236_s30, %s2232_s29  ;;  %p423_p0 = scmp.eq.s32.totalorder %s2415_s24, 3 }
  0x30   : > { %s2460_s26 = scalar_select %p186_p8, %s2240_s15, %s188_s13  }
  0x31   : > { %s2463_s10 = scalar_select %p56_p10, %s2252_s18, %s58_s28  }
  0x32   : > { %2857 = sst [smem:[#allocation32_spill]] %s2460_s26  ;;  %p2467_p12 = por %p195_p9, %p66_p2 }
  0x33   : > { %2858 = sst [smem:[#allocation33_spill]] %s2463_s10  ;;  %p2473_p13 = por %p201_p11, %p72_p6 }
  0x34   : > { %p429_p5 = scmp.eq.s32.totalorder %s1662_s25, 3  ;;  %p1821_p4 = scmp.lt.s32.totalorder %s2272_s23, 4 }
  0x35   : > { %s2860_s4 = scalar_select %p2473_p13, 1, 0 }
  0x36   : > { %p2482_p8 = por %p423_p0, %p65_p1  ;;  %p2864_p2 = scmp.ne.s32.totalorder %s2248_s17, %s2244_s16 }
  0x37   : > { %2861 = sst [smem:[#allocation34_spill]] %s2860_s4  ;;  %s2494_s29 = sand.u32 1, %s2252_s18  }
  0x38   : > { %s2862_s11 = scalar_select %p2482_p8, 1, 0 }
  0x39   : > { %p2489_p9 = por %p429_p5, %p2864_p2  ;;  %p2498_p6 = pnand %p1821_p4, %p2432_p3 }
  0x3a   : > { %2863 = sst [smem:[#allocation35_spill]] %s2862_s11  ;;  %s474_s25 = sand.u32 1, %s2272_s23  }
  0x3b   : > { %s2865_s13 = scalar_select %p2489_p9, 1, 0 }
  0x3c   : > { %s2868_s1 = sld [smem:[#allocation38_spill]]  ;;  %s477_s26 = scalar_lea.vmem [#allocation7], %s2494_s29 }
  0x3d   : > { %2866 = sst [smem:[#allocation36_spill]] %s2865_s13  ;;  %s484_s16 = sshll.u32 %s477_s26, 4  ;;  %s485_s16 = int_to_ptr.vmem [resolvable:$true] %s484_s16 }
  0x3e   : > { %p2510_p1 = pnand %p1821_p4, %p2467_p12  ;;  %s2514_s14 = scalar_lea.sflag [#allocation8], %s474_s25 }
  0x3f   : > { %p1673_p3 = scmp.ge.s32.totalorder %s2272_s23, 1  ;;  %p613_p10 = scmp.lt.s32.totalorder %s2272_s23, 5 }
  0x40   : > { %s2522_s13 = sand.u32 1, %s2240_s15   ;;  %s1764_s27 = sshll.u32 %s2264_s21, 4 }
  0x41   : > { %p2525_p11 = pnand %p1673_p3, %p613_p10  ;;  %s1667_s8 = sshll.u32 %s2522_s13, 4 }
  0x42   : > { %s480_s10 = scalar_lea.hbm %s2868_s1, %s2268_s22  ;;  %s2871_s5 = sld [smem:[#allocation42_spill]] }
  0x43   : > { %s482_s11 = sshll.u32 %s480_s10, 4  ;;  %s2872_s6 = sld [smem:[#allocation43_spill]]  ;;  %s483_s11 = int_to_ptr.hbm [resolvable:$true] %s482_s11 }
  0x44   : > { %1804 = dma.hbm_to_vmem [thread:$0]  (!%p2498_p6), %s483_s11, 16, %s485_s16, %s2514_s14  }
  0x45   : > { %s519_s16 = scalar_lea.vmem [#allocation9], %s1667_s8  ;;  %s541_s4 = scalar_lea.vmem [#allocation10], %s1667_s8 }
  0x46   : > { %s527_s11 = sshll.u32 %s519_s16, 4  ;;  %s549_s30 = sshll.u32 %s541_s4, 4  ;;  %s528_s11 = int_to_ptr.vmem [resolvable:$true] %s527_s11  ;;  %s550_s30 = int_to_ptr.vmem [resolvable:$true] %s549_s30 }
  0x47   : > { %s2274_s26 = smov 64   ;;  %s2275_s28 = smov 4  }
  0x48   : > { %s524_s1 = scalar_lea.hbm %s2871_s5, %s1764_s27  ;;  %s1665_s16 = sshll.u32 %s2494_s29, 3 }
  0x49   : > { %s525_s3 = sshll.u32 %s524_s1, 4  ;;  %s546_s2 = scalar_lea.hbm %s2872_s6, %s1764_s27  ;;  %s526_s3 = int_to_ptr.hbm [resolvable:$true] %s525_s3 }
  0x4a   : > { %s547_s19 = sshll.u32 %s546_s2, 4  ;;  %s538_s1 = scalar_lea.sflag [#allocation11], %s474_s25  ;;  %s548_s19 = int_to_ptr.hbm [resolvable:$true] %s547_s19 }
  0x4b   : > { %1810 = dma.hbm_to_vmem [thread:$0]  (!%p2510_p1), %s548_s19, 256, %s550_s30, %s538_s1, %s2274_s26, %s2274_s26, %s2275_s28  }
  0x4c   : > { %s1666_s5 = sshll.u32 %s2268_s22, 3  ;;  %s2873_s0 = sld [smem:[#allocation37_spill]] }
  0x4d   : > { %s459_s4 = scalar_lea.vmem [#allocation4], %s1665_s16  ;;  %s456_s25 = scalar_lea.sflag [#allocation5], %s2494_s29 }
  0x4e   : > { %s467_s27 = sshll.u32 %s459_s4, 4  ;;  %s2874_s7 = sld [smem:[#allocation44_spill]]  ;;  %s468_s27 = int_to_ptr.vmem [resolvable:$true] %s467_s27 }
  0x4f   : > { %1807 = dma.hbm_to_vmem [thread:$0]  (!%p2510_p1), %s526_s3, 256, %s528_s11, %s2514_s14, %s2274_s26, %s2274_s26, %s2275_s28  }
  0x50   : > { %s562_s23 = scalar_lea.vmem [#allocation12], %s2522_s13  ;;  %s2875_s9 = sld [smem:[#allocation46_spill]] }
  0x51   : > { %s587_s4 = scalar_lea.vmem [#allocation13], %s2522_s13  ;;  %s585_s3 = scalar_lea.sflag [#allocation14], %s2522_s13 }
  0x52   : > { %s463_s2 = scalar_lea.hbm %s2873_s0, %s1666_s5  ;;  %s569_s5 = sshll.u32 %s562_s23, 4  ;;  %s570_s5 = int_to_ptr.vmem [resolvable:$true] %s569_s5 }
  0x53   : > { %s465_s8 = sshll.u32 %s463_s2, 4  ;;  %s2567_s14 = sand.u32 (!%p2525_p11), 1, %s2248_s17   ;;  %s466_s8 = int_to_ptr.hbm [resolvable:$true] %s465_s8 }
  0x54   : > { %1801 = dma.hbm_to_vmem [thread:$0]  (!%p2498_p6), %s466_s8, 128, %s468_s27, %s456_s25  }
  0x55   : > { %s565_s15 = scalar_lea.hbm %s2874_s7, %s2264_s21  ;;  %s594_s27 = sshll.u32 %s587_s4, 4  ;;  %s595_s27 = int_to_ptr.vmem [resolvable:$true] %s594_s27 }
  0x56   : > { %s567_s0 = sshll.u32 %s565_s15, 4  ;;  %s590_s29 = scalar_lea.hbm %s2875_s9, %s2264_s21  ;;  %s568_s0 = int_to_ptr.hbm [resolvable:$true] %s567_s0 }
  0x57   : > { %1813 = dma.hbm_to_vmem [thread:$0]  (!%p2510_p1), %s568_s0, 16, %s570_s5, %s538_s1  }
  0x58   : > { %s592_s20 = sshll.u32 %s590_s29, 4  ;;  %617 = sbr.rel (%p2525_p11) target bundleno = 1952 (0x7a0), region = 76  ;;  %s593_s20 = int_to_ptr.hbm [resolvable:$true] %s592_s20 }
  0x59   : > { %1816 = dma.hbm_to_vmem [thread:$0]  (!%p2510_p1), %s593_s20, 16, %s595_s27, %s585_s3  }
  0x5a   : > { %s2828_s0 = sshll.u32 (!%p2525_p11), %s2567_s14, 3  ;;  %s620_s11 = scalar_lea.sflag (!%p2525_p11), [#allocation5], %s2567_s14 }
  0x5b   : > { %s2573_s1 = scalar_lea.vmem (!%p2525_p11), [#allocation4], %s2828_s0 }
  0x5d   : > { %2207 = dma.done.wait (%p2449_p7), %s620_s11, 128  }
  0x5e   : > { %2209 = vsyncadd (%p2449_p7), %s620_s11, 4294967168  ;;  %s629_s18 = sand.u32 1, %s2415_s24  }
  0x5f   : > { %s630_s13 = scalar_lea.sflag [#allocation8], %s629_s18 }
  0x60   : > { %2211 = dma.done.wait (%p2449_p7), %s630_s13, 16  }
  0x61   : > { %2213 = vsyncadd (%p2449_p7), %s630_s13, 4294967280  ;;  %s2876_s26 = sld [smem:[#allocation22_spill]] }
  0x67   : > { %s2586_s8 = sand.u32 1, %s2876_s26  }
  0x68   : > { %s1675_s25 = sshll.u32 %s2586_s8, 4 }
  0x69   : > { %s2589_s30 = scalar_lea.vmem [#allocation9], %s1675_s25 }
  0x6a   : > { %2215 = dma.done.wait (%p2473_p13), %s630_s13, 256  }
  0x6b   : > { %2217 = vsyncadd (%p2473_p13), %s630_s13, 4294967040  ;;  %s649_s24 = scalar_lea.sflag [#allocation11], %s629_s18  ;;  %s2595_s19 = scalar_lea.vmem [#allocation10], %s1675_s25 }
  0x6c   : > { %2219 = dma.done.wait (%p2473_p13), %s649_s24, 272  }
  0x6d   : > { %2221 = vsyncadd (%p2473_p13), %s649_s24, 4294967024  ;;  %s668_s15 = scalar_lea.sflag [#allocation14], %s2586_s8 }
  0x6e   : > { %2223 = dma.done.wait (%p2473_p13), %s668_s15, 16  }
  0x6f   : > { %2225 = vsyncadd (%p2473_p13), %s668_s15, 4294967280  ;;  %s2878_s5 = sld [smem:[#allocation26_spill]]  ;;  %s2885_s22 = sshll.u32 %s2567_s14, 3 }
  0x70   : > { %s2879_s27 = sld [smem:[#allocation39_spill]]  ;;  %s2642_s25 = scalar_lea.vmem [#allocation15], %s2885_s22 }
  0x71   : > { %s2880_s13 = sld [smem:[#allocation40_spill]] }
  0x72   : > { %s2881_s24 = sld [smem:[#allocation41_spill]] }
  0x73   : > { %s2882_s10 = sld [smem:[#allocation45_spill]] }
  0x74   : > { %s2883_s4 = sld [smem:[#allocation47_spill]] }
  0x75   : > { %p766_p4 = scmp.lt.s32.totalorder %s2878_s5, 1  ;;  %s2884_s18 = sld [smem:[#allocation48_spill]] }
  0x76   : > { %p1688_p7 = scmp.ne.s32.totalorder %s2878_s5, 0 }
  0x77   : > { %s767_s16 = scalar_select %p766_p4, %s2878_s5, 1 }
  0x79   : > { %s1766_s2 = sshll.u32 %s767_s16, 4  ;;  %s1769_s29 = sshll.u32 %s767_s16, 5 }
  0x7a   : > { %s2613_s3 = scalar_lea.vmem %s2879_s27, %s1766_s2  ;;  %s2618_s26 = scalar_lea.vmem %s2880_s13, %s1766_s2 }
  0x7b   : > { %s2623_s15 = scalar_lea.vmem %s2881_s24, %s1766_s2  ;;  %s2628_s0 = scalar_lea.vmem %s2882_s10, %s1769_s29 }
  0x7c   : > { %s1686_s6 = sshll.u32 %s767_s16, 1  ;;  %798 = sbr.rel (%p1688_p7) target bundleno = 131 (0x83), region = 104 }
  0x7d   : > { %s2633_s27 = scalar_lea.vmem %s2883_s4, %s1686_s6  ;;  %s2638_s13 = scalar_lea.vmem %s2884_s18, %s1686_s6 }
  0x81   : > { %v799_v0 = vld [vmem:[%s2573_s1] sm:$0xff]  ;;  %vm800_vm0 = vcmask 261120  }
  0x82   : > { %801 = vst.msk [vmem:[#allocation2] sm:$0xff] %vm800_vm0, %v799_v0 }
  0x83 PF: > { %vm816_vm1 = vcmask 261120   ;;  %v2276_v5 = vmov 32.0   ;;  %v1771_v11 = vld [vmem:[%s2613_s3 + $0x8] sm:$0xff]  ;;  %v1770_v15 = vld [vmem:[%s2613_s3] sm:$0xff]  ;;  %vm948_vm6 = vcmask 64512   ;;  %s2277_s6 = smov 112   ;;  %v807_v63 = vlaneseq }
  0x84   : > { %1928 = vrcp.f32 %v2276_v5  ;;  %v1773_v12 = vld [vmem:[%s2618_s26 + $0x8] sm:$0xff]  ;;  %879 = vmatpush.bf16.msra.mxu0 %v1771_v11  ;;  %v1772_v16 = vld [vmem:[%s2618_s26] sm:$0xff]  ;;  %s2278_s7 = smov 120   ;;  %vm983_vm7 = vcmask 1043456   ;;  %s2279_s9 = smov 104   ;;  %v2280_v5 = vmov -inf  }
  0x85   : > { %v1775_v13 = vld [vmem:[%s2623_s15 + $0x8] sm:$0xff]  ;;  %909 = vmatpush.bf16.msra.mxu1 %v1773_v12  ;;  %v1774_v17 = vld [vmem:[%s2623_s15] sm:$0xff]  ;;  %s2886_s22 = scalar_lea.vmem [#allocation7], %s2567_s14  ;;  %s2281_s1 = smov 8   ;;  %vm1070_vm9 = vcmask 130112   ;;  %vm1132_vm10 = vcmask 195712  }
  0x86   : > { %938 = vmatpush.bf16.msra.mxu2 %v1775_v13  ;;  %v1921_v30 = vld [vmem:[%s2633_s27] ss:$0 sm:$0xff]  ;;  %s2282_s10 = smov 16   ;;  %s2283_s12 = smov 24   ;;  %vm1194_vm11 = vcmask 261312   ;;  %vm1336_vm15 = vcmask 523264  }
  0x87   : > { %v1922_v35 = vld [vmem:[%s2638_s13] ss:$0 sm:$0xff]  ;;  %s2889_s23 = sld [smem:[#allocation26_spill]] }
  0x88   : > { %880 = vmatpush.bf16.msra.mxu0 %v1770_v15 }
  0x89   : > { %v2646_v1 = vld [vmem:[#allocation2] sm:$0xff]  ;;  %910 = vmatpush.bf16.msra.mxu1 %v1772_v16 }
  0x8a   : > { %v817_v2 = vsel %vm816_vm1, %v2646_v1, 0.0  ;;  %v828_v3 = vmul.f32 %v2646_v1, %v2646_v1  ;;  %v1929_v6 = vpop.eup %1928  ;;  %939 = vmatpush.bf16.msra.mxu2 %v1774_v17 }
  0x8b   : > { %818 = vadd.xlane.f32.xlu0 %v817_v2  ;;  %v821_v7 = vmul.f32 32.0, %v1929_v6  ;;  %vm825_vm2 = vweird.f32 %v1929_v6  ;;  %v808_v2 = vshrl.u32 %v807_v63, 7 }
  0x8c   : > { %v829_v4 = vsel %vm816_vm1, %v828_v3, 0.0  ;;  %v810_v3 = vand.u32 127, %v807_v63 }
  0x8d   : > { %v822_v8 = vsub.f32 1.0, %v821_v7  ;;  %p1759_p12 = scmp.ne.s32.totalorder %s2889_s23, 1 }
  0x8e   : > { %vm811_vm8 = vcmp.ge.s32.totalorder %v808_v2, %v810_v3  ;;  %s2890_s5 = sld [smem:[#allocation49_spill]] (!%p1759_p12) }
  0x8f   : > { %v823_v9 = vmul.f32 %v1929_v6, %v822_v8  ;;  %s2891_s29 = sld [smem:[#allocation50_spill]] (!%p1759_p12) }
  0x91   : > { %v824_v10 = vadd.f32 %v1929_v6, %v823_v9 }
  0x93   : > { %830 = vadd.xlane.f32.xlu0 %v829_v4  ;;  %v2659_v18 = vsel %vm825_vm2, %v1929_v6, %v824_v10  ;;  %v1923_v4 = vld [vmem:[%s2886_s22] ss:$0 sm:$0xff]  ;;  %v812_v6 = vsel %vm811_vm8, 0.0, %v2280_v5 }
  0x94   : > { %v813_v7 = vadd.f32 %v1923_v4, %v812_v6 }
  0xfe   : > { %v819_v14 = vpop.xlane.xlu0 %818 }
  0xff   : > { %v827_v19 = vmul.f32 %v2659_v18, %v819_v14 }
 0x101   : > { %v833_v21 = vmul.f32 %v827_v19, %v827_v19  ;;  %v836_v31 = vsub.f32 %v2646_v1, %v827_v19 }
 0x103   : > { %v838_v34 = vmul.f32 %v1921_v30, %v836_v31 }
 0x106   : > { %v831_v20 = vpop.xlane.xlu0 %830 }
 0x107   : > { %v832_v22 = vmul.f32 %v831_v20, %v2659_v18 }
 0x109   : > { %v834_v23 = vsub.f32 %v832_v22, %v833_v21 }
 0x10b   : > { %v835_v24 = vmax.f32 %v834_v23, 0.0 }
 0x10d   : > { %v839_v25 = vadd.f32 1e-05, %v835_v24 }
 0x10f   : > { %1930 = vrsqrt.f32 %v839_v25  ;;  %vm846_vm4 = vweird.f32 %v839_v25 }
 0x115   : > { %v1931_v26 = vpop.eup %1930 }
 0x116   : > { %v841_v27 = vmul.f32 %v1931_v26, %v839_v25  ;;  %vm847_vm3 = vweird.f32 %v1931_v26 }
 0x117   : > { %vm848_vm5 = vmor %vm846_vm4, %vm847_vm3 }
 0x118   : > { %v842_v28 = vmul.f32 %v1931_v26, %v841_v27 }
 0x11a   : > { %v843_v29 = vmul.f32 0.5, %v842_v28 }
 0x11c   : > { %v844_v32 = vsub.f32 1.5, %v843_v29 }
 0x11e   : > { %v845_v33 = vmul.f32 %v1931_v26, %v844_v32 }
 0x120   : > { %v849_v36 = vsel %vm848_vm5, %v1931_v26, %v845_v33 }
 0x121   : > { %v850_v37 = vmul.f32 %v849_v36, %v838_v34 }
 0x123   : > { %v852_v38 = vadd.f32 %v1922_v35, %v850_v37 }
 0x125   : > { %v853_v39 = vpack.c.bf16 %v852_v38, %v852_v38 }
 0x127   : > { %1697 = vmatmul.msk.bf16.vlgmr.msra.gmra.mxu0 %vm816_vm1, %v853_v39  ;;  %1706 = vmatmul.msk.bf16.vlgmr.msra.gmra.mxu1 %vm816_vm1, %v853_v39 }
 0x128   : > { %1715 = vmatmul.msk.bf16.vlgmr.msra.gmra.mxu2 %vm816_vm1, %v853_v39 }
 0x1a4   : > { %v882_v40 = vpop.f32.mrf.mxu0  ;;  %v912_v41 = vpop.f32.mrf.mxu1 }
 0x1a5   : > { %v886_v42 = vmul.f32 0.35355338, %v882_v40  ;;  %v946_v43 = vpack.c.bf16 %v912_v41, %v912_v41 }
 0x1a7   : > { %v945_v44 = vpack.c.bf16 %v886_v42, %v886_v42  ;;  %v1007_v45 = vunpack.c.l.b16 %v946_v43  ;;  %v953_v46 = vsel %vm948_vm6, %v946_v43, 0 }
 0x1a8   : > { %962 = vmatpush.bf16.xpose.msra.mxu3 %v953_v46 }
 0x1a9   : > { %v1002_v47 = vunpack.c.l.b16 %v945_v44  ;;  %v1008_v48 = vpack.c.b16 %v1007_v45, %v1007_v45 }
 0x1ab   : > { %v1003_v49 = vpack.c.b16 %v1002_v47, %v1002_v47  ;;  %v941_v50 = vpop.f32.mrf.mxu2  ;;  %1074 = vrot.lane.b32.xlu2 %v1008_v48, %s2277_s6  ;;  %1009 = vrot.lane.b32.xlu1 %v1008_v48, %s2278_s7 }
 0x1ac   : > { %v2672_v51 = vpack.c.bf16 %v941_v50, %v941_v50  ;;  %v884_v52 = vpop.f32.mrf.mxu0  ;;  %v914_v53 = vpop.f32.mrf.mxu1 }
 0x1ad   : > { %1072 = vrot.lane.b32.xlu0 %v1003_v49, %s2277_s6 }
 0x1ae   : > { %v985_v54 = vsel %vm983_vm7, %v2672_v51, 0  ;;  %v1043_v50 = vunpack.c.l.b16 %v2672_v51 }
 0x1af   : > { %994 = vmatpush.bf16.msrb.mxu0 %v985_v54  ;;  %1716 = vmatmul.msk.bf16.vlgmr.msra.gmra.mxu3 %vm948_vm6, %v945_v44 }
 0x1b0   : > { %v1044_v52 = vpack.c.b16 %v1043_v50, %v1043_v50 }
 0x1b3   : > { %v943_v55 = vpop.f32.mrf.mxu2  ;;  %1136 = vrot.lane.b32.xlu2 %v1008_v48, %s2279_s9  ;;  %1004 = vrot.lane.b32.xlu1 %v1003_v49, %s2278_s7 }
 0x1bb   : > { %1134 = vrot.lane.b32.xlu1 %v1003_v49, %s2279_s9 }
 0x205   : > { %v1075_v56 = vpop.permute.xlu2 %1074 }
 0x206   : > { %v1080_v57 = vsel %vm948_vm6, %v1075_v56, 0 }
 0x207   : > { %1089 = vmatpush.bf16.xpose.msrb.mxu3 %v1080_v57 }
 0x20d   : > { %v1137_v58 = vpop.permute.xlu2 %1136 }
 0x20e   : > { %v1142_v61 = vsel %vm948_vm6, %v1137_v58, 0 }
 0x21d   : > { %v1010_v59 = vpop.permute.xlu1 %1009 }
 0x21e   : > { %v1015_v60 = vsel %vm948_vm6, %v1010_v59, 0 }
 0x21f   : > { %1024 = vmatpush.bf16.xpose.msrb.mxu1 %v1015_v60  ;;  %v1073_v62 = vpop.permute.xlu0 %1072 }
 0x220   : > { %1720 = vmatmul.msk.bf16.vlgmr.msrb.gmra.mxu3 %vm948_vm6, %v1073_v62 }
 0x225   : > { %v1005_v0 = vpop.permute.xlu1 %1004 }
 0x226   : > { %1718 = vmatmul.msk.bf16.vlgmr.msrb.gmra.mxu1 %vm948_vm6, %v1005_v0 }
 0x227   : > { %1151 = vmatpush.bf16.xpose.msra.mxu1 %v1142_v61 }
 0x22d   : > { %v1135_v10 = vpop.permute.xlu1 %1134 }
 0x232   : > { %v964_v8 = vpop.f32.mrf.mxu3 }
 0x233   : > { %v965_v9 = vadd.f32 %v964_v8, %v813_v7 }
 0x235   : > { %v968_v11 = vsel %vm948_vm6, %v965_v9, -inf }
 0x236   : > { %1722 = vmatmul.msk.bf16.vlgmr.msra.gmra.mxu1 %vm948_vm6, %v1135_v10  ;;  %969 = vmax.xlane.f32.xlu1 %v968_v11 }
 0x23a   : > { %v966_v12 = vpop.f32.mrf.mxu3 }
 0x2a3   : > { %v1026_v13 = vpop.f32.mrf.mxu1  ;;  %v1091_v14 = vpop.f32.mrf.mxu3 }
 0x2a4   : > { %v1027_v15 = vadd.f32 %v1026_v13, %v813_v7  ;;  %v1092_v19 = vadd.f32 %v1091_v14, %v813_v7 }
 0x2a6   : > { %v1030_v16 = vsel %vm948_vm6, %v1027_v15, -inf  ;;  %v1095_v24 = vsel %vm948_vm6, %v1092_v19, -inf }
 0x2a7   : > { %1031 = vmax.xlane.f32.xlu2 %v1030_v16 }
 0x2a9   : > { %v970_v17 = vpop.xlane.xlu1 %969 }
 0x2aa   : > { %v971_v20 = vsub.f32 %v965_v9, %v970_v17  ;;  %v1777_v17 = vld [vmem:[%s2589_s30 + $0x8] sm:$0xff] }
 0x2ab   : > { %v1028_v21 = vpop.f32.mrf.mxu1  ;;  %v1093_v22 = vpop.f32.mrf.mxu3  ;;  %1223 = vmatpush.bf16.msra.mxu3 %v1777_v17 }
 0x2ac   : > { %v972_v23 = vmul.f32 1.442695, %v971_v20 }
 0x2ae   : > { %1932 = vpow2.f32 %v972_v23 }
 0x2af   : > { %1096 = vmax.xlane.f32.xlu2 %v1095_v24 }
 0x2b3   : > { %v1153_v25 = vpop.f32.mrf.mxu1 }
 0x2b4   : > { %v1933_v26 = vpop.eup %1932  ;;  %v1154_v27 = vadd.f32 %v1153_v25, %v813_v7 }
 0x2b5   : > { %v974_v28 = vsel %vm948_vm6, %v1933_v26, 0.0 }
 0x2b6   : > { %975 = vadd.xlane.f32.xlu1 %v974_v28  ;;  %v1157_v29 = vsel %vm948_vm6, %v1154_v27, -inf }
 0x2b7   : > { %1158 = vmax.xlane.f32.xlu0 %v1157_v29  ;;  %v1779_v29 = vld [vmem:[%s2595_s19 + $0x8] sm:$0xff] }
 0x2bb   : > { %v1155_v30 = vpop.f32.mrf.mxu1 }
 0x2bc   : > { %v1778_v30 = vld [vmem:[%s2595_s19] sm:$0xff]  ;;  %s2888_s19 = scalar_lea.vmem [#allocation13], %s2586_s8 }
 0x31a   : > { %v1032_v31 = vpop.xlane.xlu2 %1031 }
 0x31b   : > { %v1033_v32 = vsub.f32 %v1027_v15, %v1032_v31 }
 0x31d   : > { %v1034_v33 = vmul.f32 1.442695, %v1033_v32 }
 0x31f   : > { %1934 = vpow2.f32 %v1034_v33 }
 0x322   : > { %v1097_v34 = vpop.xlane.xlu2 %1096 }
 0x323   : > { %v1098_v35 = vsub.f32 %v1092_v19, %v1097_v34  ;;  %v1776_v19 = vld [vmem:[%s2589_s30] sm:$0xff]  ;;  %s2887_s30 = scalar_lea.vmem [#allocation12], %s2586_s8 }
 0x324   : > { %1224 = vmatpush.bf16.msra.mxu3 %v1776_v19 }
 0x325   : > { %v1935_v36 = vpop.eup %1934  ;;  %v1099_v37 = vmul.f32 1.442695, %v1098_v35  ;;  %v1783_v35 = vld [vmem:[%s2628_s0 + $0x18] sm:$0xff] }
 0x326   : > { %v1036_v38 = vsel %vm948_vm6, %v1935_v36, 0.0  ;;  %1344 = vmatpush.bf16.msrb.mxu1 %v1783_v35 }
 0x327   : > { %1936 = vpow2.f32 %v1099_v37  ;;  %1037 = vadd.xlane.f32.xlu2 %v1036_v38  ;;  %v1782_v37 = vld [vmem:[%s2628_s0 + $0x10] sm:$0xff] }
 0x329   : > { %v976_v39 = vpop.xlane.xlu1 %975 }
 0x32a   : > { %1938 = vrcp.f32 %v976_v39  ;;  %v1159_v40 = vpop.xlane.xlu0 %1158  ;;  %1345 = vmatpush.bf16.msrb.mxu1 %v1782_v37 }
 0x32b   : > { %v1160_v41 = vsub.f32 %v1154_v27, %v1159_v40 }
 0x32d   : > { %v1937_v42 = vpop.eup %1936  ;;  %v1161_v43 = vmul.f32 1.442695, %v1160_v41 }
 0x32e   : > { %v1101_v44 = vsel %vm948_vm6, %v1937_v42, 0.0 }
 0x32f   : > { %1940 = vpow2.f32 %v1161_v43  ;;  %1102 = vadd.xlane.f32.xlu0 %v1101_v44  ;;  %v1924_v44 = vld [vmem:[%s2633_s27 + $0x1] ss:$0 sm:$0xff] }
 0x330   : > { %v1939_v45 = vpop.eup %1938 }
 0x331   : > { %v978_v46 = vmul.f32 %v1939_v45, %v1933_v26 }
 0x333   : > { %v979_v47 = vpack.c.bf16 %v978_v46, %v978_v46 }
 0x335   : > { %v1941_v48 = vpop.eup %1940  ;;  %1717 = vmatmul.msk.bf16.vlgmr.msrb.gmra.mxu0 %vm948_vm6, %v979_v47 }
 0x336   : > { %v1163_v49 = vsel %vm948_vm6, %v1941_v48, 0.0 }
 0x337   : > { %1164 = vadd.xlane.f32.xlu1 %v1163_v49  ;;  %v1925_v49 = vld [vmem:[%s2638_s13 + $0x1] ss:$0 sm:$0xff] }
 0x33f   : > { %1045 = vrot.lane.b32.xlu2 %v1044_v52, %s2278_s7 }
 0x343   : > { %1107 = vrot.lane.b32.xlu0 %v1044_v52, %s2277_s6 }
 0x350   : > { %1169 = vrot.lane.b32.xlu1 %v1044_v52, %s2279_s9 }
 0x39a   : > { %v1038_v53 = vpop.xlane.xlu2 %1037 }
 0x39b   : > { %1942 = vrcp.f32 %v1038_v53 }
 0x3a1   : > { %v1943_v54 = vpop.eup %1942 }
 0x3a2   : > { %v1040_v55 = vmul.f32 %v1943_v54, %v1935_v36  ;;  %v1046_v56 = vpop.permute.xlu2 %1045  ;;  %v1103_v59 = vpop.xlane.xlu0 %1102 }
 0x3a3   : > { %v1051_v57 = vsel %vm983_vm7, %v1046_v56, 0  ;;  %1944 = vrcp.f32 %v1103_v59  ;;  %v1780_v56 = vld [vmem:[%s2628_s0] sm:$0xff] }
 0x3a4   : > { %1060 = vmatpush.bf16.msrb.mxu2 %v1051_v57  ;;  %v1041_v58 = vpack.c.bf16 %v1040_v55, %v1040_v55  ;;  %v1781_v55 = vld [vmem:[%s2628_s0 + $0x8] sm:$0xff]  ;;  %v1926_v57 = vld [vmem:[%s2887_s30] ss:$0 sm:$0xff] }
 0x3a5   : > { %1346 = vmatpush.bf16.msrb.mxu1 %v1781_v55 }
 0x3a7   : > { %1719 = vmatmul.msk.bf16.vlgmr.msrb.gmra.mxu2 %vm948_vm6, %v1041_v58 }
 0x3a9   : > { %v1945_v51 = vpop.eup %1944  ;;  %1347 = vmatpush.bf16.msrb.mxu1 %v1780_v56 }
 0x3aa   : > { %v1105_v61 = vmul.f32 %v1945_v51, %v1937_v42  ;;  %v1165_v62 = vpop.xlane.xlu1 %1164 }
 0x3ab   : > { %1946 = vrcp.f32 %v1165_v62  ;;  %v1927_v62 = vld [vmem:[%s2888_s19] ss:$0 sm:$0xff] }
 0x3ac   : > { %v1106_v2 = vpack.c.bf16 %v1105_v61, %v1105_v61 }
 0x3b1   : > { %v1947_v4 = vpop.eup %1946 }
 0x3b2   : > { %v996_v60 = vpop.f32.mrf.mxu0  ;;  %v1167_v5 = vmul.f32 %v1947_v4, %v1941_v48 }
 0x3b3   : > { %1000 = vst.msk [vmem:[#allocation3] sm:$0xff] %vm948_vm6, %v996_v60 }
 0x3b4   : > { %v1168_v8 = vpack.c.bf16 %v1167_v5, %v1167_v5 }
 0x3b5   : > { %v1108_v63 = vpop.permute.xlu0 %1107 }
 0x3b6   : > { %v1113_v0 = vsel %vm983_vm7, %v1108_v63, 0 }
 0x3b7   : > { %1122 = vmatpush.bf16.msra.mxu0 %v1113_v0 }
 0x3ba   : > { %v998_v3 = vpop.f32.mrf.mxu0  ;;  %1721 = vmatmul.msk.bf16.vlgmr.msra.gmra.mxu0 %vm948_vm6, %v1106_v2 }
 0x3bb   : > { %1291 = vmatpush.bf16.msrb.mxu0 %v1779_v29 }
 0x3bf   : > { %1292 = vmatpush.bf16.msrb.mxu0 %v1778_v30 }
 0x3c2   : > { %v1170_v6 = vpop.permute.xlu1 %1169 }
 0x3c3   : > { %v1175_v7 = vsel %vm983_vm7, %v1170_v6, 0 }
 0x3c4   : > { %1184 = vmatpush.bf16.msra.mxu2 %v1175_v7 }
 0x3c7   : > { %1723 = vmatmul.msk.bf16.vlgmr.msra.gmra.mxu2 %vm948_vm6, %v1168_v8 }
 0x42a   : > { %v1062_v9 = vpop.f32.mrf.mxu2 }
 0x42b   : > { %1067 = vrot.lane.b32.xlu2 %v1062_v9, %s2281_s1 }
 0x432   : > { %v1064_v10 = vpop.f32.mrf.mxu2 }
 0x437   : > { %v1124_v11 = vpop.f32.mrf.mxu0 }
 0x438   : > { %1129 = vrot.lane.b32.xlu2 %v1124_v11, %s2282_s10 }
 0x43f   : > { %v1126_v12 = vpop.f32.mrf.mxu0 }
 0x44a   : > { %v1186_v13 = vpop.f32.mrf.mxu2 }
 0x44b   : > { %1191 = vrot.lane.b32.xlu0 %v1186_v13, %s2283_s12 }
 0x452   : > { %v1188_v14 = vpop.f32.mrf.mxu2 }
 0x485   : > { %v1068_v15 = vpop.permute.xlu2 %1067 }
 0x486   : > { %1071 = vst.msk [vmem:[#allocation3] sm:$0xff] %vm1070_vm9, %v1068_v15 }
 0x492   : > { %v1130_v16 = vpop.permute.xlu2 %1129 }
 0x493   : > { %1133 = vst.msk [vmem:[#allocation3] sm:$0xff] %vm1132_vm10, %v1130_v16 }
 0x4bd   : > { %v1192_v20 = vpop.permute.xlu0 %1191 }
 0x4be   : > { %1195 = vst.msk [vmem:[#allocation3] sm:$0xff] %vm1194_vm11, %v1192_v20 }
 0x4c5   : > { %v1196_v21 = vld [vmem:[#allocation3] sm:$0xff] }
 0x4c6   : > { %v1197_v22 = vpack.c.bf16 %v1196_v21, %v1196_v21 }
 0x4c8   : > { %1732 = vmatmul.msk.bf16.vlgmr.msra.gmra.mxu3 %vm816_vm1, %v1197_v22 }
 0x54b   : > { %v1226_v23 = vpop.f32.mrf.mxu3 }
 0x54c   : > { %v1227_v24 = vadd.f32 %v1226_v23, %v2646_v1 }
 0x54e   : > { %v1232_v25 = vsel %vm816_vm1, %v1227_v24, 0.0  ;;  %v1236_v26 = vmul.f32 %v1227_v24, %v1227_v24 }
 0x54f   : > { %1233 = vadd.xlane.f32.xlu1 %v1232_v25 }
 0x550   : > { %v1237_v27 = vsel %vm816_vm1, %v1236_v26, 0.0 }
 0x551   : > { %1238 = vadd.xlane.f32.xlu2 %v1237_v27 }
 0x553   : > { %v1228_v28 = vpop.f32.mrf.mxu3 }
 0x5c2   : > { %v1234_v31 = vpop.xlane.xlu1 %1233 }
 0x5c3   : > { %v1235_v32 = vmul.f32 %v1234_v31, %v2659_v18 }
 0x5c4   : > { %v1239_v33 = vpop.xlane.xlu2 %1238 }
 0x5c5   : > { %v1241_v1 = vmul.f32 %v1235_v32, %v1235_v32  ;;  %v1240_v34 = vmul.f32 %v1239_v33, %v2659_v18  ;;  %v1244_v45 = vsub.f32 %v1227_v24, %v1235_v32 }
 0x5c7   : > { %v1242_v36 = vsub.f32 %v1240_v34, %v1241_v1  ;;  %v1246_v48 = vmul.f32 %v1924_v44, %v1244_v45 }
 0x5c9   : > { %v1243_v38 = vmax.f32 %v1242_v36, 0.0 }
 0x5cb   : > { %v1247_v39 = vadd.f32 1e-05, %v1243_v38 }
 0x5cd   : > { %1948 = vrsqrt.f32 %v1247_v39  ;;  %vm1254_vm13 = vweird.f32 %v1247_v39 }
 0x5d3   : > { %v1949_v40 = vpop.eup %1948 }
 0x5d4   : > { %v1249_v41 = vmul.f32 %v1949_v40, %v1247_v39  ;;  %vm1255_vm12 = vweird.f32 %v1949_v40 }
 0x5d5   : > { %vm1256_vm14 = vmor %vm1254_vm13, %vm1255_vm12 }
 0x5d6   : > { %v1250_v42 = vmul.f32 %v1949_v40, %v1249_v41 }
 0x5d8   : > { %v1251_v43 = vmul.f32 0.5, %v1250_v42 }
 0x5da   : > { %v1252_v46 = vsub.f32 1.5, %v1251_v43 }
 0x5dc   : > { %v1253_v47 = vmul.f32 %v1949_v40, %v1252_v46 }
 0x5de   : > { %v1257_v50 = vsel %vm1256_vm14, %v1949_v40, %v1253_v47 }
 0x5df   : > { %v1258_v52 = vmul.f32 %v1257_v50, %v1246_v48 }
 0x5e1   : > { %v1260_v53 = vadd.f32 %v1925_v49, %v1258_v52 }
 0x5e3   : > { %v1261_v54 = vpack.c.bf16 %v1260_v53, %v1260_v53 }
 0x5e5   : > { %1741 = vmatmul.msk.bf16.vlgmr.msrb.gmra.mxu0 %vm816_vm1, %v1261_v54 }
 0x662   : > { %v1294_v58 = vpop.f32.mrf.mxu0 }
 0x663   : > { %v1295_v59 = vadd.f32 %v1926_v57, %v1294_v58 }
 0x665   : > { %v1298_v51 = vmax.f32 %v1295_v59, 0.0 }
 0x667   : > { %v1299_v60 = vpack.c.bf16 %v1298_v51, %v1298_v51 }
 0x669   : > { %1758 = vmatmul.msk.bf16.vlgmr.msrb.gmra.mxu1 %vm1336_vm15, %v1299_v60 }
 0x66a   : > { %v1296_v61 = vpop.f32.mrf.mxu0 }
 0x6e6   : > { %v1349_v63 = vpop.f32.mrf.mxu1 }
 0x6e7   : > { %v1350_v0 = vadd.f32 %v1927_v62, %v1349_v63 }
 0x6e9   : > { %v1353_v2 = vadd.f32 %v1350_v0, %v1227_v24 }
 0x6ea   : > { %1358 = sbr.rel (%p1759_p12) target bundleno = 1931 (0x78b), region = 108 }
 0x6eb   : > { %1354 = vst.msk [vmem:[#allocation2] sm:$0xff] %vm816_vm1, %v1353_v2 }
 0x6ee   : > { %v1351_v3 = vpop.f32.mrf.mxu1 }
 0x6ef   : > { %v1361_v4 = vsel %vm816_vm1, %v1353_v2, 0.0  ;;  %v1365_v5 = vmul.f32 %v1353_v2, %v1353_v2  ;;  %v1950_v21 = vld [vmem:[%s2890_s5] ss:$0 sm:$0xff] }
 0x6f0   : > { %1362 = vadd.xlane.f32.xlu0 %v1361_v4 }
 0x6f1   : > { %v1366_v6 = vsel %vm816_vm1, %v1365_v5, 0.0 }
 0x6f8   : > { %1367 = vadd.xlane.f32.xlu0 %v1366_v6 }
 0x763   : > { %v1363_v7 = vpop.xlane.xlu0 %1362 }
 0x764   : > { %v1364_v8 = vmul.f32 %v1363_v7, %v2659_v18 }
 0x766   : > { %v1370_v10 = vmul.f32 %v1364_v8, %v1364_v8  ;;  %v1373_v20 = vsub.f32 %v1353_v2, %v1364_v8 }
 0x768   : > { %v1377_v24 = vmul.f32 %v1950_v21, %v1373_v20 }
 0x76b   : > { %v1368_v9 = vpop.xlane.xlu0 %1367 }
 0x76c   : > { %v1369_v11 = vmul.f32 %v1368_v9, %v2659_v18  ;;  %v1951_v18 = vld [vmem:[%s2891_s29] ss:$0 sm:$0xff] }
 0x76e   : > { %v1371_v12 = vsub.f32 %v1369_v11, %v1370_v10 }
 0x770   : > { %v1372_v13 = vmax.f32 %v1371_v12, 0.0 }
 0x772   : > { %v1378_v14 = vadd.f32 1e-05, %v1372_v13 }
 0x774   : > { %1952 = vrsqrt.f32 %v1378_v14  ;;  %vm1385_vm2 = vweird.f32 %v1378_v14 }
 0x77a   : > { %v1953_v15 = vpop.eup %1952 }
 0x77b   : > { %v1380_v16 = vmul.f32 %v1953_v15, %v1378_v14  ;;  %vm1386_vm0 = vweird.f32 %v1953_v15 }
 0x77c   : > { %vm1387_vm3 = vmor %vm1385_vm2, %vm1386_vm0 }
 0x77d   : > { %v1381_v17 = vmul.f32 %v1953_v15, %v1380_v16 }
 0x77f   : > { %v1382_v19 = vmul.f32 0.5, %v1381_v17 }
 0x781   : > { %v1383_v22 = vsub.f32 1.5, %v1382_v19 }
 0x783   : > { %v1384_v23 = vmul.f32 %v1953_v15, %v1383_v22 }
 0x785   : > { %v1388_v25 = vsel %vm1387_vm3, %v1953_v15, %v1384_v23 }
 0x786   : > { %v1389_v26 = vmul.f32 %v1388_v25, %v1377_v24 }
 0x788   : > { %v1393_v27 = vadd.f32 %v1951_v18, %v1389_v26 }
 0x78a   : > { %1394 = vst.msk [vmem:[%s2642_s25] sm:$0xff] %vm816_vm1, %v1393_v27 }
 0x78b PF: > { %s2892_s3 = sld [smem:[#allocation27_spill]]  ;;  %s1408_s11 = sshll.u32 %s2642_s25, 4  ;;  %s1409_s11 = int_to_ptr.vmem [resolvable:$true] %s1408_s11 }
 0x78c   : > { %s2894_s20 = sld [smem:[#allocation51_spill]]  ;;  %s1396_s13 = scalar_lea.sflag [#allocation6], %s2567_s14 }
 0x791   : > { %s1761_s28 = sshll.u32 %s2892_s3, 3 }
 0x792   : > { %s2895_s4 = smov %s2894_s20  ;;  %s1406_s27 = scalar_lea.hbm %s2894_s20, %s1761_s28 }
 0x793   : > { %s1410_s18 = sshll.u32 %s1406_s27, 4  ;;  %s2154_s1 = scalar_lea.hbm %s2895_s4, 16  ;;  %s1411_s18 = int_to_ptr.hbm [resolvable:$true] %s1410_s18 }
 0x794   : > { %s2148_s6 = sshra.s32 %s1411_s18, 4  ;;  %s2149_s6 = int_to_ptr.hbm [resolvable:$true] %s2148_s6 }
 0x795   : > { %s2150_s7 = scalar_lea.hbm %s2149_s6, 8  ;;  %p2155_p2 = scmp.lt.s32.totalorder %s2149_s6, %s2895_s4 }
 0x796   : > { %p2151_p13 = scmp.ne.s32.totalorder %s2149_s6, %s2150_s7  ;;  %p2156_p6 = scmp.lt.s32.totalorder %s2154_s1, %s2150_s7 }
 0x798   : > { %p2152_p0 = pnand %p2151_p13, %p2482_p8  ;;  %p2157_p1 = por %p2156_p6, %p2155_p2 }
 0x79a   : > { %p2153_p5 = pneg %p2152_p0 }
 0x79c   : > { %p2158_p3 = pnand %p2157_p1, %p2153_p5 }
 0x79e   : > { %2161 = shalt.err (!%p2158_p3)
}
 0x79f   : > { %1796 = dma.vmem_to_hbm [thread:$0]  (%p2482_p8), %s1409_s11, 128, %s1411_s18, %s1396_s13  }
 0x7a0 PF: > { %s2896_s14 = sld [smem:[#allocation29_spill]] }
 0x7a1   : > { %s2897_s25 = sld [smem:[#allocation24_spill]] }
 0x7a6   : > { %p1822_p10 = scmp.ge.s32.totalorder %s2896_s14, 2 }
 0x7a7   : > { %s1422_s19 = sand.u32 1, %s2897_s25  }
 0x7a8   : > { %p1818_p11 = pnand %p1822_p10, %p2489_p9  ;;  %s1423_s23 = scalar_lea.sflag [#allocation6], %s1422_s19 }
 0x7aa   : > { %p1819_p4 = pneg %p1818_p11 }
 0x7ac   : > { %2227 = dma.done.wait (%p1819_p4), %s1423_s23, 128  }
 0x7ad   : > { %2229 = vsyncadd (%p1819_p4), %s1423_s23, 4294967168  ;;  %s39_s23 = sadd.s32 1, %s2896_s14   ;;  %s2899_s29 = sld [smem:[#allocation22_spill]] }
 0x7ae   : > { %p36_p7 = scmp.ge.s32.totalorder %s39_s23, 6   ;;  %s2900_s30 = sld [smem:[#allocation23_spill]] }
 0x7af   : > { %s2901_s15 = sld [smem:[#allocation32_spill]]  ;;  %s2907_s16 = smov %s2248_s17 }
 0x7b0   : > { %s2902_s0 = sld [smem:[#allocation25_spill]]  ;;  %s2909_s19 = smov %s2264_s21 }
 0x7b1   : > { %s2903_s18 = sld [smem:[#allocation33_spill]] }
 0x7b2   : > { %s2904_s20 = sld [smem:[#allocation28_spill]] }
 0x7b3   : > { %s2905_s8 = sld [smem:[#allocation30_spill]] }
 0x7b4   : > { %s2906_s22 = sld [smem:[#allocation31_spill]] }
 0x7b5   :  { %38 = sbr.rel (!%p36_p7) target bundleno = 31 (0x1f), region = 208 }
 0x7b6   : > { %s2908_s17 = smov %s2902_s0 }
 0x7b9   : > { %s2910_s21 = smov %s2905_s8 }
 0x7ba   :  { %1429 = vsyncpa [#allocation5], 1 }
 0x7bb   :  { %1431 = vsyncpa [#allocation5 + $0x1], 1 }
 0x7bc   :  { %1432 = vsyncpa [#allocation8], 1 }
 0x7bd   :  { %1434 = vsyncpa [#allocation8 + $0x1], 1 }
 0x7be   :  { %1435 = vsyncpa [#allocation11], 1 }
 0x7bf   :  { %1437 = vsyncpa [#allocation11 + $0x1], 1 }
 0x7c0   :  { %1438 = vsyncpa [#allocation14], 1 }
 0x7c1   :  { %1440 = vsyncpa [#allocation14 + $0x1], 1 }
 0x7c2   :  { %1441 = vsyncpa [#allocation6], 1 }
 0x7c3   :  { %1443 = vsyncpa [#allocation6 + $0x1], 1 }

</bundles_post_ra>
